<compile_context>
chip_gen: v6e
topology: v6e:2x2x1
jax: 0.10.0
libtpu: 0.0.40
codegen_flags: <defaults>
</compile_context>

<pallas_src>
import functools

import jax
import jax.numpy as jnp
from jax.experimental import pallas as pl
from jax.experimental.pallas import tpu as pltpu

_N_OUT_PAD = 128  # pad dense output to a full 128-lane vreg for unmasked stores


def _gru2_dense_kernel(gi0_ref,      # (T, B, 3H) layer-0 input proj (+ folded biases)
                       whh0_ref,     # (H, 3H)
                       bhn0_ref,     # (1, H)     b_hh0 for the n gate
                       wih1_ref,     # (H, 3H)
                       whh1_ref,     # (H, 3H)
                       bi1_ref,      # (1, 3H)    b_ih1 + b_hh1(r,z) pre-folded
                       bhn1_ref,     # (1, H)     b_hh1 for the n gate
                       wd_ref,       # (H, 128)   dense weights, lane-padded
                       bd_ref,       # (1, 128)   dense bias, lane-padded
                       out_ref,      # (T*B, 128)
                       y1_ref):      # scratch (T*B, H): layer-1 hidden states
    T, B, G = gi0_ref.shape
    H = G // 3

    # Hoist all weight loads and bias broadcasts out of the unrolled loop
    # (JAX does not CSE broadcast_in_dim across iterations).
    whh0 = whh0_ref[...]
    wih1 = wih1_ref[...]
    whh1 = whh1_ref[...]
    bhn0 = jnp.broadcast_to(bhn0_ref[...], (B, H))
    bhn1 = jnp.broadcast_to(bhn1_ref[...], (B, H))
    bi1 = jnp.broadcast_to(bi1_ref[...], (B, G))

    def gates(gi, gh, bhn, h_prev):
        # gi already contains b_ih (all gates) + b_hh (r, z gates)
        r = jax.nn.sigmoid(gi[:, :H] + gh[:, :H])
        z = jax.nn.sigmoid(gi[:, H:2 * H] + gh[:, H:2 * H])
        n = jnp.tanh(gi[:, 2 * H:] + r * (gh[:, 2 * H:] + bhn))
        return (1.0 - z) * n + z * h_prev

    h0 = jnp.zeros((B, H), jnp.float32)
    h1 = jnp.zeros((B, H), jnp.float32)   # PyTorch default h0 = zeros
    gi1_prev = None

    # Software wavefront, fully unrolled (T is small & static): iteration t runs
    # layer-0 step t and layer-1 step t-1 -> two independent matmul/gate chains
    # per iteration that the scheduler can overlap.
    for t in range(T + 1):
        gi1_cur = gi1_prev
        if t < T:
            gh0 = jnp.dot(h0, whh0, preferred_element_type=jnp.float32)
            h0 = gates(gi0_ref[t], gh0, bhn0, h0)
            # layer-1 input projection for step t (off layer-1's critical path)
            gi1_prev = jnp.dot(h0, wih1,
                               preferred_element_type=jnp.float32) + bi1
        if t > 0:
            gh1 = jnp.dot(h1, whh1, preferred_element_type=jnp.float32)
            h1 = gates(gi1_cur, gh1, bhn1, h1)
            y1_ref[pl.ds((t - 1) * B, B), :] = h1

    # Single batched, lane-dense dense projection + one unmasked store.
    out_ref[...] = jnp.dot(y1_ref[...], wd_ref[...],
                           preferred_element_type=jnp.float32) + bd_ref[...]


def init_params(key, dim=32, vocab=10, n_out=10):
    """Deterministic parameter init mirroring the module's shapes."""
    H = 2 * dim
    ks = jax.random.split(key, 12)
    s = 1.0 / jnp.sqrt(H)

    def u(k, shape):
        return jax.random.uniform(k, shape, jnp.float32, -s, s)

    return {
        "embedding": jax.random.normal(ks[0], (vocab, dim), jnp.float32),
        # layer 0: input size = 2*dim = H
        "w_ih0": u(ks[1], (3 * H, H)), "w_hh0": u(ks[2], (3 * H, H)),
        "b_ih0": u(ks[3], (3 * H,)),   "b_hh0": u(ks[4], (3 * H,)),
        # layer 1: input size = hidden size = H
        "w_ih1": u(ks[5], (3 * H, H)), "w_hh1": u(ks[6], (3 * H, H)),
        "b_ih1": u(ks[7], (3 * H,)),   "b_hh1": u(ks[8], (3 * H,)),
        # dense
        "w_d": u(ks[9], (n_out, H)),   "b_d": u(ks[10], (n_out,)),
    }


@functools.partial(jax.jit, static_argnames=("dim",))
def my_adv_rnn_forward(params, num1, num2, dim=32):
    """num1, num2: int32 (B, T) with values in [0, 10). Returns (B, T, 10) f32."""
    B, T = num1.shape
    H = 2 * dim
    n_out = params["b_d"].shape[0]

    # ---- fold the layer-0 input projection into the (vocab=10) embedding ----
    wih0_T = params["w_ih0"].T                           # (2*dim, 3H)
    table1 = params["embedding"] @ wih0_T[:dim]          # (10, 3H) first operand
    table2 = params["embedding"] @ wih0_T[dim:]          # (10, 3H) second operand
    # fold b_ih0 (all gates) + b_hh0 (r, z gates) into the input side
    bias0 = params["b_ih0"] + jnp.concatenate(
        [params["b_hh0"][:2 * H], jnp.zeros((H,), jnp.float32)])
    gi0 = (jnp.take(table1, num1, axis=0)
           + jnp.take(table2, num2, axis=0) + bias0)     # (B, T, 3H)
    gi0 = jnp.transpose(gi0, (1, 0, 2))                  # (T, B, 3H) time-major

    whh0_T = params["w_hh0"].T                           # (H, 3H)
    bhn0 = params["b_hh0"][2 * H:][None, :]              # (1, H)

    wih1_T = params["w_ih1"].T                           # (H, 3H)
    whh1_T = params["w_hh1"].T                           # (H, 3H)
    bi1 = (params["b_ih1"] + jnp.concatenate(
        [params["b_hh1"][:2 * H], jnp.zeros((H,), jnp.float32)]))[None, :]
    bhn1 = params["b_hh1"][2 * H:][None, :]              # (1, H)

    # dense weights zero-padded to 128 output lanes -> unmasked lane-dense store
    wd_pad = jnp.zeros((H, _N_OUT_PAD), jnp.float32).at[:, :n_out].set(params["w_d"].T)
    bd_pad = jnp.zeros((1, _N_OUT_PAD), jnp.float32).at[:, :n_out].set(params["b_d"][None, :])

    vmem = pl.BlockSpec(memory_space=pltpu.MemorySpace.VMEM)
    out_flat = pl.pallas_call(
        _gru2_dense_kernel,
        out_shape=jax.ShapeDtypeStruct((T * B, _N_OUT_PAD), jnp.float32),
        in_specs=[vmem] * 9,
        out_specs=vmem,
        scratch_shapes=[pltpu.VMEM((T * B, H), jnp.float32)],  # layer-1 outputs
    )(gi0, whh0_T, bhn0, wih1_T, whh1_T, bi1, bhn1, wd_pad, bd_pad)

    out = out_flat.reshape(T, B, _N_OUT_PAD)[:, :, :n_out]     # (T, B, 10)
    return jnp.transpose(out, (1, 0, 2))                       # (B, T, 10)


def _reference_forward(params, num1, num2, dim=32):
    """Pure-JAX reference of the same PyTorch forward, for a sanity check."""
    H = 2 * dim
    e1 = jnp.take(params["embedding"], num1, axis=0)
    e2 = jnp.take(params["embedding"], num2, axis=0)
    x = jnp.concatenate([e1, e2], axis=-1)                     # (B, T, 2*dim)

    def cell(x_t, h, wih, whh, bih, bhh):
        gi = x_t @ wih.T + bih
        gh = h @ whh.T + bhh
        i_r, i_z, i_n = jnp.split(gi, 3, axis=-1)
        h_r, h_z, h_n = jnp.split(gh, 3, axis=-1)
        r = jax.nn.sigmoid(i_r + h_r)
        z = jax.nn.sigmoid(i_z + h_z)
        n = jnp.tanh(i_n + r * h_n)
        return (1.0 - z) * n + z * h

    def run_layer(xs, wih, whh, bih, bhh):
        B = xs.shape[0]
        h = jnp.zeros((B, H), jnp.float32)
        ys = []
        for t in range(xs.shape[1]):
            h = cell(xs[:, t], h, wih, whh, bih, bhh)
            ys.append(h)
        return jnp.stack(ys, axis=1)

    y0 = run_layer(x, params["w_ih0"], params["w_hh0"], params["b_ih0"], params["b_hh0"])
    y1 = run_layer(y0, params["w_ih1"], params["w_hh1"], params["b_ih1"], params["b_hh1"])
    return y1 @ params["w_d"].T + params["b_d"]


if __name__ == "__main__":
    dim = 32          # hidden size H = 2*dim = 64
    B, T = 2, 8

    key = jax.random.PRNGKey(0)
    pkey, k1, k2 = jax.random.split(key, 3)
    params = init_params(pkey, dim=dim)

    num1 = jax.random.randint(k1, (B, T), 0, 10, dtype=jnp.int32)
    num2 = jax.random.randint(k2, (B, T), 0, 10, dtype=jnp.int32)

    logits = my_adv_rnn_forward(params, num1, num2, dim=dim)
    jax.block_until_ready(logits)
    assert logits.shape == (B, T, 10), logits.shape

    ref = _reference_forward(params, num1, num2, dim=dim)
    assert jnp.allclose(logits, ref, atol=2e-4, rtol=2e-4), \
        float(jnp.max(jnp.abs(logits - ref)))

    print("KERNEL_OK")
</pallas_src>

<mosaic_0001>
module attributes {stable_mosaic.version = 11 : i64} {
  func.func @_gru2_dense_kernel(%arg0: memref<8x2x192xf32, #tpu.memory_space<vmem>>, %arg1: memref<64x192xf32, #tpu.memory_space<vmem>>, %arg2: memref<1x64xf32, #tpu.memory_space<vmem>>, %arg3: memref<64x192xf32, #tpu.memory_space<vmem>>, %arg4: memref<64x192xf32, #tpu.memory_space<vmem>>, %arg5: memref<1x192xf32, #tpu.memory_space<vmem>>, %arg6: memref<1x64xf32, #tpu.memory_space<vmem>>, %arg7: memref<64x128xf32, #tpu.memory_space<vmem>>, %arg8: memref<1x128xf32, #tpu.memory_space<vmem>>, %arg9: memref<16x128xf32, #tpu.memory_space<vmem>>, %arg10: memref<16x64xf32, #tpu.memory_space<vmem>>) attributes {dimension_semantics = [], scalar_prefetch = 0 : i64, scratch_operands = 1 : i64, tpu.core_type = #tpu.core_type<tc>} {
    %c0 = arith.constant 0 : index
    %c0_0 = arith.constant 0 : index
    %0 = vector.load %arg1[%c0, %c0_0] : memref<64x192xf32, #tpu.memory_space<vmem>>, vector<64x192xf32>
    %c0_1 = arith.constant 0 : index
    %c0_2 = arith.constant 0 : index
    %1 = vector.load %arg3[%c0_1, %c0_2] : memref<64x192xf32, #tpu.memory_space<vmem>>, vector<64x192xf32>
    %c0_3 = arith.constant 0 : index
    %c0_4 = arith.constant 0 : index
    %2 = vector.load %arg4[%c0_3, %c0_4] : memref<64x192xf32, #tpu.memory_space<vmem>>, vector<64x192xf32>
    %c0_5 = arith.constant 0 : index
    %c0_6 = arith.constant 0 : index
    %3 = vector.load %arg2[%c0_5, %c0_6] : memref<1x64xf32, #tpu.memory_space<vmem>>, vector<1x64xf32>
    %4 = vector.shape_cast %3 : vector<1x64xf32> to vector<1x64xf32>
    %5 = vector.broadcast %4 : vector<1x64xf32> to vector<2x64xf32>
    %c0_7 = arith.constant 0 : index
    %c0_8 = arith.constant 0 : index
    %6 = vector.load %arg6[%c0_7, %c0_8] : memref<1x64xf32, #tpu.memory_space<vmem>>, vector<1x64xf32>
    %7 = vector.shape_cast %6 : vector<1x64xf32> to vector<1x64xf32>
    %8 = vector.broadcast %7 : vector<1x64xf32> to vector<2x64xf32>
    %c0_9 = arith.constant 0 : index
    %c0_10 = arith.constant 0 : index
    %9 = vector.load %arg5[%c0_9, %c0_10] : memref<1x192xf32, #tpu.memory_space<vmem>>, vector<1x192xf32>
    %10 = vector.shape_cast %9 : vector<1x192xf32> to vector<1x192xf32>
    %11 = vector.broadcast %10 : vector<1x192xf32> to vector<2x192xf32>
    %cst = arith.constant 0.000000e+00 : f32
    %12 = vector.broadcast %cst : f32 to vector<2x64xf32>
    %cst_11 = arith.constant 0.000000e+00 : f32
    %13 = vector.broadcast %cst_11 : f32 to vector<2x64xf32>
    %cst_12 = arith.constant dense<0.000000e+00> : vector<2x192xf32>
    %14 = tpu.matmul %12, %0, %cst_12 {dimension_numbers = #tpu.dot_dimension_numbers<[1], [0], [0], [1], [0, 0, 1, 1], [], []>} : vector<2x64xf32>, vector<64x192xf32>, vector<2x192xf32> -> vector<2x192xf32>
    %c0_13 = arith.constant 0 : index
    %c0_14 = arith.constant 0 : index
    %c0_15 = arith.constant 0 : index
    %15 = vector.load %arg0[%c0_13, %c0_14, %c0_15] : memref<8x2x192xf32, #tpu.memory_space<vmem>>, vector<1x2x192xf32>
    %16 = vector.shape_cast %15 : vector<1x2x192xf32> to vector<2x192xf32>
    %17 = vector.extract_strided_slice %16 {offsets = [0, 0], sizes = [2, 64], strides = [1, 1]} : vector<2x192xf32> to vector<2x64xf32>
    %18 = vector.extract_strided_slice %14 {offsets = [0, 0], sizes = [2, 64], strides = [1, 1]} : vector<2x192xf32> to vector<2x64xf32>
    %19 = arith.addf %17, %18 : vector<2x64xf32>
    %20 = arith.negf %19 : vector<2x64xf32>
    %21 = math.exp %20 : vector<2x64xf32>
    %cst_16 = arith.constant 1.000000e+00 : f32
    %22 = vector.broadcast %cst_16 : f32 to vector<2x64xf32>
    %23 = arith.addf %22, %21 : vector<2x64xf32>
    %24 = arith.divf %22, %23 : vector<2x64xf32>
    %25 = vector.extract_strided_slice %16 {offsets = [0, 64], sizes = [2, 64], strides = [1, 1]} : vector<2x192xf32> to vector<2x64xf32>
    %26 = vector.extract_strided_slice %14 {offsets = [0, 64], sizes = [2, 64], strides = [1, 1]} : vector<2x192xf32> to vector<2x64xf32>
    %27 = arith.addf %25, %26 : vector<2x64xf32>
    %28 = arith.negf %27 : vector<2x64xf32>
    %29 = math.exp %28 : vector<2x64xf32>
    %cst_17 = arith.constant 1.000000e+00 : f32
    %30 = vector.broadcast %cst_17 : f32 to vector<2x64xf32>
    %31 = arith.addf %30, %29 : vector<2x64xf32>
    %32 = arith.divf %30, %31 : vector<2x64xf32>
    %33 = vector.extract_strided_slice %16 {offsets = [0, 128], sizes = [2, 64], strides = [1, 1]} : vector<2x192xf32> to vector<2x64xf32>
    %34 = vector.extract_strided_slice %14 {offsets = [0, 128], sizes = [2, 64], strides = [1, 1]} : vector<2x192xf32> to vector<2x64xf32>
    %35 = arith.addf %34, %5 : vector<2x64xf32>
    %36 = arith.mulf %24, %35 : vector<2x64xf32>
    %37 = arith.addf %33, %36 : vector<2x64xf32>
    %38 = math.tanh %37 : vector<2x64xf32>
    %cst_18 = arith.constant 1.000000e+00 : f32
    %39 = vector.broadcast %cst_18 : f32 to vector<2x64xf32>
    %40 = arith.subf %39, %32 : vector<2x64xf32>
    %41 = arith.mulf %40, %38 : vector<2x64xf32>
    %42 = arith.mulf %32, %12 : vector<2x64xf32>
    %43 = arith.addf %41, %42 : vector<2x64xf32>
    %cst_19 = arith.constant dense<0.000000e+00> : vector<2x192xf32>
    %44 = tpu.matmul %43, %1, %cst_19 {dimension_numbers = #tpu.dot_dimension_numbers<[1], [0], [0], [1], [0, 0, 1, 1], [], []>} : vector<2x64xf32>, vector<64x192xf32>, vector<2x192xf32> -> vector<2x192xf32>
    %45 = arith.addf %44, %11 : vector<2x192xf32>
    %cst_20 = arith.constant dense<0.000000e+00> : vector<2x192xf32>
    %46 = tpu.matmul %43, %0, %cst_20 {dimension_numbers = #tpu.dot_dimension_numbers<[1], [0], [0], [1], [0, 0, 1, 1], [], []>} : vector<2x64xf32>, vector<64x192xf32>, vector<2x192xf32> -> vector<2x192xf32>
    %c1 = arith.constant 1 : index
    %c0_21 = arith.constant 0 : index
    %c0_22 = arith.constant 0 : index
    %47 = vector.load %arg0[%c1, %c0_21, %c0_22] : memref<8x2x192xf32, #tpu.memory_space<vmem>>, vector<1x2x192xf32>
    %48 = vector.shape_cast %47 : vector<1x2x192xf32> to vector<2x192xf32>
    %49 = vector.extract_strided_slice %48 {offsets = [0, 0], sizes = [2, 64], strides = [1, 1]} : vector<2x192xf32> to vector<2x64xf32>
    %50 = vector.extract_strided_slice %46 {offsets = [0, 0], sizes = [2, 64], strides = [1, 1]} : vector<2x192xf32> to vector<2x64xf32>
    %51 = arith.addf %49, %50 : vector<2x64xf32>
    %52 = arith.negf %51 : vector<2x64xf32>
    %53 = math.exp %52 : vector<2x64xf32>
    %cst_23 = arith.constant 1.000000e+00 : f32
    %54 = vector.broadcast %cst_23 : f32 to vector<2x64xf32>
    %55 = arith.addf %54, %53 : vector<2x64xf32>
    %56 = arith.divf %54, %55 : vector<2x64xf32>
    %57 = vector.extract_strided_slice %48 {offsets = [0, 64], sizes = [2, 64], strides = [1, 1]} : vector<2x192xf32> to vector<2x64xf32>
    %58 = vector.extract_strided_slice %46 {offsets = [0, 64], sizes = [2, 64], strides = [1, 1]} : vector<2x192xf32> to vector<2x64xf32>
    %59 = arith.addf %57, %58 : vector<2x64xf32>
    %60 = arith.negf %59 : vector<2x64xf32>
    %61 = math.exp %60 : vector<2x64xf32>
    %cst_24 = arith.constant 1.000000e+00 : f32
    %62 = vector.broadcast %cst_24 : f32 to vector<2x64xf32>
    %63 = arith.addf %62, %61 : vector<2x64xf32>
    %64 = arith.divf %62, %63 : vector<2x64xf32>
    %65 = vector.extract_strided_slice %48 {offsets = [0, 128], sizes = [2, 64], strides = [1, 1]} : vector<2x192xf32> to vector<2x64xf32>
    %66 = vector.extract_strided_slice %46 {offsets = [0, 128], sizes = [2, 64], strides = [1, 1]} : vector<2x192xf32> to vector<2x64xf32>
    %67 = arith.addf %66, %5 : vector<2x64xf32>
    %68 = arith.mulf %56, %67 : vector<2x64xf32>
    %69 = arith.addf %65, %68 : vector<2x64xf32>
    %70 = math.tanh %69 : vector<2x64xf32>
    %cst_25 = arith.constant 1.000000e+00 : f32
    %71 = vector.broadcast %cst_25 : f32 to vector<2x64xf32>
    %72 = arith.subf %71, %64 : vector<2x64xf32>
    %73 = arith.mulf %72, %70 : vector<2x64xf32>
    %74 = arith.mulf %64, %43 : vector<2x64xf32>
    %75 = arith.addf %73, %74 : vector<2x64xf32>
    %cst_26 = arith.constant dense<0.000000e+00> : vector<2x192xf32>
    %76 = tpu.matmul %75, %1, %cst_26 {dimension_numbers = #tpu.dot_dimension_numbers<[1], [0], [0], [1], [0, 0, 1, 1], [], []>} : vector<2x64xf32>, vector<64x192xf32>, vector<2x192xf32> -> vector<2x192xf32>
    %77 = arith.addf %76, %11 : vector<2x192xf32>
    %cst_27 = arith.constant dense<0.000000e+00> : vector<2x192xf32>
    %78 = tpu.matmul %13, %2, %cst_27 {dimension_numbers = #tpu.dot_dimension_numbers<[1], [0], [0], [1], [0, 0, 1, 1], [], []>} : vector<2x64xf32>, vector<64x192xf32>, vector<2x192xf32> -> vector<2x192xf32>
    %79 = vector.extract_strided_slice %45 {offsets = [0, 0], sizes = [2, 64], strides = [1, 1]} : vector<2x192xf32> to vector<2x64xf32>
    %80 = vector.extract_strided_slice %78 {offsets = [0, 0], sizes = [2, 64], strides = [1, 1]} : vector<2x192xf32> to vector<2x64xf32>
    %81 = arith.addf %79, %80 : vector<2x64xf32>
    %82 = arith.negf %81 : vector<2x64xf32>
    %83 = math.exp %82 : vector<2x64xf32>
    %cst_28 = arith.constant 1.000000e+00 : f32
    %84 = vector.broadcast %cst_28 : f32 to vector<2x64xf32>
    %85 = arith.addf %84, %83 : vector<2x64xf32>
    %86 = arith.divf %84, %85 : vector<2x64xf32>
    %87 = vector.extract_strided_slice %45 {offsets = [0, 64], sizes = [2, 64], strides = [1, 1]} : vector<2x192xf32> to vector<2x64xf32>
    %88 = vector.extract_strided_slice %78 {offsets = [0, 64], sizes = [2, 64], strides = [1, 1]} : vector<2x192xf32> to vector<2x64xf32>
    %89 = arith.addf %87, %88 : vector<2x64xf32>
    %90 = arith.negf %89 : vector<2x64xf32>
    %91 = math.exp %90 : vector<2x64xf32>
    %cst_29 = arith.constant 1.000000e+00 : f32
    %92 = vector.broadcast %cst_29 : f32 to vector<2x64xf32>
    %93 = arith.addf %92, %91 : vector<2x64xf32>
    %94 = arith.divf %92, %93 : vector<2x64xf32>
    %95 = vector.extract_strided_slice %45 {offsets = [0, 128], sizes = [2, 64], strides = [1, 1]} : vector<2x192xf32> to vector<2x64xf32>
    %96 = vector.extract_strided_slice %78 {offsets = [0, 128], sizes = [2, 64], strides = [1, 1]} : vector<2x192xf32> to vector<2x64xf32>
    %97 = arith.addf %96, %8 : vector<2x64xf32>
    %98 = arith.mulf %86, %97 : vector<2x64xf32>
    %99 = arith.addf %95, %98 : vector<2x64xf32>
    %100 = math.tanh %99 : vector<2x64xf32>
    %cst_30 = arith.constant 1.000000e+00 : f32
    %101 = vector.broadcast %cst_30 : f32 to vector<2x64xf32>
    %102 = arith.subf %101, %94 : vector<2x64xf32>
    %103 = arith.mulf %102, %100 : vector<2x64xf32>
    %104 = arith.mulf %94, %13 : vector<2x64xf32>
    %105 = arith.addf %103, %104 : vector<2x64xf32>
    %c0_31 = arith.constant 0 : index
    %c0_32 = arith.constant 0 : index
    %106 = vector.load %arg10[%c0_31, %c0_32] : memref<16x64xf32, #tpu.memory_space<vmem>>, vector<2x64xf32>
    tpu.vector_store %arg10[%c0_31, %c0_32], %105 {strides = array<i32>} : memref<16x64xf32, #tpu.memory_space<vmem>>, vector<2x64xf32>,
    %cst_33 = arith.constant dense<0.000000e+00> : vector<2x192xf32>
    %107 = tpu.matmul %75, %0, %cst_33 {dimension_numbers = #tpu.dot_dimension_numbers<[1], [0], [0], [1], [0, 0, 1, 1], [], []>} : vector<2x64xf32>, vector<64x192xf32>, vector<2x192xf32> -> vector<2x192xf32>
    %c2 = arith.constant 2 : index
    %c0_34 = arith.constant 0 : index
    %c0_35 = arith.constant 0 : index
    %108 = vector.load %arg0[%c2, %c0_34, %c0_35] : memref<8x2x192xf32, #tpu.memory_space<vmem>>, vector<1x2x192xf32>
    %109 = vector.shape_cast %108 : vector<1x2x192xf32> to vector<2x192xf32>
    %110 = vector.extract_strided_slice %109 {offsets = [0, 0], sizes = [2, 64], strides = [1, 1]} : vector<2x192xf32> to vector<2x64xf32>
    %111 = vector.extract_strided_slice %107 {offsets = [0, 0], sizes = [2, 64], strides = [1, 1]} : vector<2x192xf32> to vector<2x64xf32>
    %112 = arith.addf %110, %111 : vector<2x64xf32>
    %113 = arith.negf %112 : vector<2x64xf32>
    %114 = math.exp %113 : vector<2x64xf32>
    %cst_36 = arith.constant 1.000000e+00 : f32
    %115 = vector.broadcast %cst_36 : f32 to vector<2x64xf32>
    %116 = arith.addf %115, %114 : vector<2x64xf32>
    %117 = arith.divf %115, %116 : vector<2x64xf32>
    %118 = vector.extract_strided_slice %109 {offsets = [0, 64], sizes = [2, 64], strides = [1, 1]} : vector<2x192xf32> to vector<2x64xf32>
    %119 = vector.extract_strided_slice %107 {offsets = [0, 64], sizes = [2, 64], strides = [1, 1]} : vector<2x192xf32> to vector<2x64xf32>
    %120 = arith.addf %118, %119 : vector<2x64xf32>
    %121 = arith.negf %120 : vector<2x64xf32>
    %122 = math.exp %121 : vector<2x64xf32>
    %cst_37 = arith.constant 1.000000e+00 : f32
    %123 = vector.broadcast %cst_37 : f32 to vector<2x64xf32>
    %124 = arith.addf %123, %122 : vector<2x64xf32>
    %125 = arith.divf %123, %124 : vector<2x64xf32>
    %126 = vector.extract_strided_slice %109 {offsets = [0, 128], sizes = [2, 64], strides = [1, 1]} : vector<2x192xf32> to vector<2x64xf32>
    %127 = vector.extract_strided_slice %107 {offsets = [0, 128], sizes = [2, 64], strides = [1, 1]} : vector<2x192xf32> to vector<2x64xf32>
    %128 = arith.addf %127, %5 : vector<2x64xf32>
    %129 = arith.mulf %117, %128 : vector<2x64xf32>
    %130 = arith.addf %126, %129 : vector<2x64xf32>
    %131 = math.tanh %130 : vector<2x64xf32>
    %cst_38 = arith.constant 1.000000e+00 : f32
    %132 = vector.broadcast %cst_38 : f32 to vector<2x64xf32>
    %133 = arith.subf %132, %125 : vector<2x64xf32>
    %134 = arith.mulf %133, %131 : vector<2x64xf32>
    %135 = arith.mulf %125, %75 : vector<2x64xf32>
    %136 = arith.addf %134, %135 : vector<2x64xf32>
    %cst_39 = arith.constant dense<0.000000e+00> : vector<2x192xf32>
    %137 = tpu.matmul %136, %1, %cst_39 {dimension_numbers = #tpu.dot_dimension_numbers<[1], [0], [0], [1], [0, 0, 1, 1], [], []>} : vector<2x64xf32>, vector<64x192xf32>, vector<2x192xf32> -> vector<2x192xf32>
    %138 = arith.addf %137, %11 : vector<2x192xf32>
    %cst_40 = arith.constant dense<0.000000e+00> : vector<2x192xf32>
    %139 = tpu.matmul %105, %2, %cst_40 {dimension_numbers = #tpu.dot_dimension_numbers<[1], [0], [0], [1], [0, 0, 1, 1], [], []>} : vector<2x64xf32>, vector<64x192xf32>, vector<2x192xf32> -> vector<2x192xf32>
    %140 = vector.extract_strided_slice %77 {offsets = [0, 0], sizes = [2, 64], strides = [1, 1]} : vector<2x192xf32> to vector<2x64xf32>
    %141 = vector.extract_strided_slice %139 {offsets = [0, 0], sizes = [2, 64], strides = [1, 1]} : vector<2x192xf32> to vector<2x64xf32>
    %142 = arith.addf %140, %141 : vector<2x64xf32>
    %143 = arith.negf %142 : vector<2x64xf32>
    %144 = math.exp %143 : vector<2x64xf32>
    %cst_41 = arith.constant 1.000000e+00 : f32
    %145 = vector.broadcast %cst_41 : f32 to vector<2x64xf32>
    %146 = arith.addf %145, %144 : vector<2x64xf32>
    %147 = arith.divf %145, %146 : vector<2x64xf32>
    %148 = vector.extract_strided_slice %77 {offsets = [0, 64], sizes = [2, 64], strides = [1, 1]} : vector<2x192xf32> to vector<2x64xf32>
    %149 = vector.extract_strided_slice %139 {offsets = [0, 64], sizes = [2, 64], strides = [1, 1]} : vector<2x192xf32> to vector<2x64xf32>
    %150 = arith.addf %148, %149 : vector<2x64xf32>
    %151 = arith.negf %150 : vector<2x64xf32>
    %152 = math.exp %151 : vector<2x64xf32>
    %cst_42 = arith.constant 1.000000e+00 : f32
    %153 = vector.broadcast %cst_42 : f32 to vector<2x64xf32>
    %154 = arith.addf %153, %152 : vector<2x64xf32>
    %155 = arith.divf %153, %154 : vector<2x64xf32>
    %156 = vector.extract_strided_slice %77 {offsets = [0, 128], sizes = [2, 64], strides = [1, 1]} : vector<2x192xf32> to vector<2x64xf32>
    %157 = vector.extract_strided_slice %139 {offsets = [0, 128], sizes = [2, 64], strides = [1, 1]} : vector<2x192xf32> to vector<2x64xf32>
    %158 = arith.addf %157, %8 : vector<2x64xf32>
    %159 = arith.mulf %147, %158 : vector<2x64xf32>
    %160 = arith.addf %156, %159 : vector<2x64xf32>
    %161 = math.tanh %160 : vector<2x64xf32>
    %cst_43 = arith.constant 1.000000e+00 : f32
    %162 = vector.broadcast %cst_43 : f32 to vector<2x64xf32>
    %163 = arith.subf %162, %155 : vector<2x64xf32>
    %164 = arith.mulf %163, %161 : vector<2x64xf32>
    %165 = arith.mulf %155, %105 : vector<2x64xf32>
    %166 = arith.addf %164, %165 : vector<2x64xf32>
    %c2_44 = arith.constant 2 : index
    %c0_45 = arith.constant 0 : index
    %167 = vector.load %arg10[%c2_44, %c0_45] : memref<16x64xf32, #tpu.memory_space<vmem>>, vector<2x64xf32>
    tpu.vector_store %arg10[%c2_44, %c0_45], %166 {strides = array<i32>} : memref<16x64xf32, #tpu.memory_space<vmem>>, vector<2x64xf32>,
    %cst_46 = arith.constant dense<0.000000e+00> : vector<2x192xf32>
    %168 = tpu.matmul %136, %0, %cst_46 {dimension_numbers = #tpu.dot_dimension_numbers<[1], [0], [0], [1], [0, 0, 1, 1], [], []>} : vector<2x64xf32>, vector<64x192xf32>, vector<2x192xf32> -> vector<2x192xf32>
    %c3 = arith.constant 3 : index
    %c0_47 = arith.constant 0 : index
    %c0_48 = arith.constant 0 : index
    %169 = vector.load %arg0[%c3, %c0_47, %c0_48] : memref<8x2x192xf32, #tpu.memory_space<vmem>>, vector<1x2x192xf32>
    %170 = vector.shape_cast %169 : vector<1x2x192xf32> to vector<2x192xf32>
    %171 = vector.extract_strided_slice %170 {offsets = [0, 0], sizes = [2, 64], strides = [1, 1]} : vector<2x192xf32> to vector<2x64xf32>
    %172 = vector.extract_strided_slice %168 {offsets = [0, 0], sizes = [2, 64], strides = [1, 1]} : vector<2x192xf32> to vector<2x64xf32>
    %173 = arith.addf %171, %172 : vector<2x64xf32>
    %174 = arith.negf %173 : vector<2x64xf32>
    %175 = math.exp %174 : vector<2x64xf32>
    %cst_49 = arith.constant 1.000000e+00 : f32
    %176 = vector.broadcast %cst_49 : f32 to vector<2x64xf32>
    %177 = arith.addf %176, %175 : vector<2x64xf32>
    %178 = arith.divf %176, %177 : vector<2x64xf32>
    %179 = vector.extract_strided_slice %170 {offsets = [0, 64], sizes = [2, 64], strides = [1, 1]} : vector<2x192xf32> to vector<2x64xf32>
    %180 = vector.extract_strided_slice %168 {offsets = [0, 64], sizes = [2, 64], strides = [1, 1]} : vector<2x192xf32> to vector<2x64xf32>
    %181 = arith.addf %179, %180 : vector<2x64xf32>
    %182 = arith.negf %181 : vector<2x64xf32>
    %183 = math.exp %182 : vector<2x64xf32>
    %cst_50 = arith.constant 1.000000e+00 : f32
    %184 = vector.broadcast %cst_50 : f32 to vector<2x64xf32>
    %185 = arith.addf %184, %183 : vector<2x64xf32>
    %186 = arith.divf %184, %185 : vector<2x64xf32>
    %187 = vector.extract_strided_slice %170 {offsets = [0, 128], sizes = [2, 64], strides = [1, 1]} : vector<2x192xf32> to vector<2x64xf32>
    %188 = vector.extract_strided_slice %168 {offsets = [0, 128], sizes = [2, 64], strides = [1, 1]} : vector<2x192xf32> to vector<2x64xf32>
    %189 = arith.addf %188, %5 : vector<2x64xf32>
    %190 = arith.mulf %178, %189 : vector<2x64xf32>
    %191 = arith.addf %187, %190 : vector<2x64xf32>
    %192 = math.tanh %191 : vector<2x64xf32>
    %cst_51 = arith.constant 1.000000e+00 : f32
    %193 = vector.broadcast %cst_51 : f32 to vector<2x64xf32>
    %194 = arith.subf %193, %186 : vector<2x64xf32>
    %195 = arith.mulf %194, %192 : vector<2x64xf32>
    %196 = arith.mulf %186, %136 : vector<2x64xf32>
    %197 = arith.addf %195, %196 : vector<2x64xf32>
    %cst_52 = arith.constant dense<0.000000e+00> : vector<2x192xf32>
    %198 = tpu.matmul %197, %1, %cst_52 {dimension_numbers = #tpu.dot_dimension_numbers<[1], [0], [0], [1], [0, 0, 1, 1], [], []>} : vector<2x64xf32>, vector<64x192xf32>, vector<2x192xf32> -> vector<2x192xf32>
    %199 = arith.addf %198, %11 : vector<2x192xf32>
    %cst_53 = arith.constant dense<0.000000e+00> : vector<2x192xf32>
    %200 = tpu.matmul %166, %2, %cst_53 {dimension_numbers = #tpu.dot_dimension_numbers<[1], [0], [0], [1], [0, 0, 1, 1], [], []>} : vector<2x64xf32>, vector<64x192xf32>, vector<2x192xf32> -> vector<2x192xf32>
    %201 = vector.extract_strided_slice %138 {offsets = [0, 0], sizes = [2, 64], strides = [1, 1]} : vector<2x192xf32> to vector<2x64xf32>
    %202 = vector.extract_strided_slice %200 {offsets = [0, 0], sizes = [2, 64], strides = [1, 1]} : vector<2x192xf32> to vector<2x64xf32>
    %203 = arith.addf %201, %202 : vector<2x64xf32>
    %204 = arith.negf %203 : vector<2x64xf32>
    %205 = math.exp %204 : vector<2x64xf32>
    %cst_54 = arith.constant 1.000000e+00 : f32
    %206 = vector.broadcast %cst_54 : f32 to vector<2x64xf32>
    %207 = arith.addf %206, %205 : vector<2x64xf32>
    %208 = arith.divf %206, %207 : vector<2x64xf32>
    %209 = vector.extract_strided_slice %138 {offsets = [0, 64], sizes = [2, 64], strides = [1, 1]} : vector<2x192xf32> to vector<2x64xf32>
    %210 = vector.extract_strided_slice %200 {offsets = [0, 64], sizes = [2, 64], strides = [1, 1]} : vector<2x192xf32> to vector<2x64xf32>
    %211 = arith.addf %209, %210 : vector<2x64xf32>
    %212 = arith.negf %211 : vector<2x64xf32>
    %213 = math.exp %212 : vector<2x64xf32>
    %cst_55 = arith.constant 1.000000e+00 : f32
    %214 = vector.broadcast %cst_55 : f32 to vector<2x64xf32>
    %215 = arith.addf %214, %213 : vector<2x64xf32>
    %216 = arith.divf %214, %215 : vector<2x64xf32>
    %217 = vector.extract_strided_slice %138 {offsets = [0, 128], sizes = [2, 64], strides = [1, 1]} : vector<2x192xf32> to vector<2x64xf32>
    %218 = vector.extract_strided_slice %200 {offsets = [0, 128], sizes = [2, 64], strides = [1, 1]} : vector<2x192xf32> to vector<2x64xf32>
    %219 = arith.addf %218, %8 : vector<2x64xf32>
    %220 = arith.mulf %208, %219 : vector<2x64xf32>
    %221 = arith.addf %217, %220 : vector<2x64xf32>
    %222 = math.tanh %221 : vector<2x64xf32>
    %cst_56 = arith.constant 1.000000e+00 : f32
    %223 = vector.broadcast %cst_56 : f32 to vector<2x64xf32>
    %224 = arith.subf %223, %216 : vector<2x64xf32>
    %225 = arith.mulf %224, %222 : vector<2x64xf32>
    %226 = arith.mulf %216, %166 : vector<2x64xf32>
    %227 = arith.addf %225, %226 : vector<2x64xf32>
    %c4 = arith.constant 4 : index
    %c0_57 = arith.constant 0 : index
    %228 = vector.load %arg10[%c4, %c0_57] : memref<16x64xf32, #tpu.memory_space<vmem>>, vector<2x64xf32>
    tpu.vector_store %arg10[%c4, %c0_57], %227 {strides = array<i32>} : memref<16x64xf32, #tpu.memory_space<vmem>>, vector<2x64xf32>,
    %cst_58 = arith.constant dense<0.000000e+00> : vector<2x192xf32>
    %229 = tpu.matmul %197, %0, %cst_58 {dimension_numbers = #tpu.dot_dimension_numbers<[1], [0], [0], [1], [0, 0, 1, 1], [], []>} : vector<2x64xf32>, vector<64x192xf32>, vector<2x192xf32> -> vector<2x192xf32>
    %c4_59 = arith.constant 4 : index
    %c0_60 = arith.constant 0 : index
    %c0_61 = arith.constant 0 : index
    %230 = vector.load %arg0[%c4_59, %c0_60, %c0_61] : memref<8x2x192xf32, #tpu.memory_space<vmem>>, vector<1x2x192xf32>
    %231 = vector.shape_cast %230 : vector<1x2x192xf32> to vector<2x192xf32>
    %232 = vector.extract_strided_slice %231 {offsets = [0, 0], sizes = [2, 64], strides = [1, 1]} : vector<2x192xf32> to vector<2x64xf32>
    %233 = vector.extract_strided_slice %229 {offsets = [0, 0], sizes = [2, 64], strides = [1, 1]} : vector<2x192xf32> to vector<2x64xf32>
    %234 = arith.addf %232, %233 : vector<2x64xf32>
    %235 = arith.negf %234 : vector<2x64xf32>
    %236 = math.exp %235 : vector<2x64xf32>
    %cst_62 = arith.constant 1.000000e+00 : f32
    %237 = vector.broadcast %cst_62 : f32 to vector<2x64xf32>
    %238 = arith.addf %237, %236 : vector<2x64xf32>
    %239 = arith.divf %237, %238 : vector<2x64xf32>
    %240 = vector.extract_strided_slice %231 {offsets = [0, 64], sizes = [2, 64], strides = [1, 1]} : vector<2x192xf32> to vector<2x64xf32>
    %241 = vector.extract_strided_slice %229 {offsets = [0, 64], sizes = [2, 64], strides = [1, 1]} : vector<2x192xf32> to vector<2x64xf32>
    %242 = arith.addf %240, %241 : vector<2x64xf32>
    %243 = arith.negf %242 : vector<2x64xf32>
    %244 = math.exp %243 : vector<2x64xf32>
    %cst_63 = arith.constant 1.000000e+00 : f32
    %245 = vector.broadcast %cst_63 : f32 to vector<2x64xf32>
    %246 = arith.addf %245, %244 : vector<2x64xf32>
    %247 = arith.divf %245, %246 : vector<2x64xf32>
    %248 = vector.extract_strided_slice %231 {offsets = [0, 128], sizes = [2, 64], strides = [1, 1]} : vector<2x192xf32> to vector<2x64xf32>
    %249 = vector.extract_strided_slice %229 {offsets = [0, 128], sizes = [2, 64], strides = [1, 1]} : vector<2x192xf32> to vector<2x64xf32>
    %250 = arith.addf %249, %5 : vector<2x64xf32>
    %251 = arith.mulf %239, %250 : vector<2x64xf32>
    %252 = arith.addf %248, %251 : vector<2x64xf32>
    %253 = math.tanh %252 : vector<2x64xf32>
    %cst_64 = arith.constant 1.000000e+00 : f32
    %254 = vector.broadcast %cst_64 : f32 to vector<2x64xf32>
    %255 = arith.subf %254, %247 : vector<2x64xf32>
    %256 = arith.mulf %255, %253 : vector<2x64xf32>
    %257 = arith.mulf %247, %197 : vector<2x64xf32>
    %258 = arith.addf %256, %257 : vector<2x64xf32>
    %cst_65 = arith.constant dense<0.000000e+00> : vector<2x192xf32>
    %259 = tpu.matmul %258, %1, %cst_65 {dimension_numbers = #tpu.dot_dimension_numbers<[1], [0], [0], [1], [0, 0, 1, 1], [], []>} : vector<2x64xf32>, vector<64x192xf32>, vector<2x192xf32> -> vector<2x192xf32>
    %260 = arith.addf %259, %11 : vector<2x192xf32>
    %cst_66 = arith.constant dense<0.000000e+00> : vector<2x192xf32>
    %261 = tpu.matmul %227, %2, %cst_66 {dimension_numbers = #tpu.dot_dimension_numbers<[1], [0], [0], [1], [0, 0, 1, 1], [], []>} : vector<2x64xf32>, vector<64x192xf32>, vector<2x192xf32> -> vector<2x192xf32>
    %262 = vector.extract_strided_slice %199 {offsets = [0, 0], sizes = [2, 64], strides = [1, 1]} : vector<2x192xf32> to vector<2x64xf32>
    %263 = vector.extract_strided_slice %261 {offsets = [0, 0], sizes = [2, 64], strides = [1, 1]} : vector<2x192xf32> to vector<2x64xf32>
    %264 = arith.addf %262, %263 : vector<2x64xf32>
    %265 = arith.negf %264 : vector<2x64xf32>
    %266 = math.exp %265 : vector<2x64xf32>
    %cst_67 = arith.constant 1.000000e+00 : f32
    %267 = vector.broadcast %cst_67 : f32 to vector<2x64xf32>
    %268 = arith.addf %267, %266 : vector<2x64xf32>
    %269 = arith.divf %267, %268 : vector<2x64xf32>
    %270 = vector.extract_strided_slice %199 {offsets = [0, 64], sizes = [2, 64], strides = [1, 1]} : vector<2x192xf32> to vector<2x64xf32>
    %271 = vector.extract_strided_slice %261 {offsets = [0, 64], sizes = [2, 64], strides = [1, 1]} : vector<2x192xf32> to vector<2x64xf32>
    %272 = arith.addf %270, %271 : vector<2x64xf32>
    %273 = arith.negf %272 : vector<2x64xf32>
    %274 = math.exp %273 : vector<2x64xf32>
    %cst_68 = arith.constant 1.000000e+00 : f32
    %275 = vector.broadcast %cst_68 : f32 to vector<2x64xf32>
    %276 = arith.addf %275, %274 : vector<2x64xf32>
    %277 = arith.divf %275, %276 : vector<2x64xf32>
    %278 = vector.extract_strided_slice %199 {offsets = [0, 128], sizes = [2, 64], strides = [1, 1]} : vector<2x192xf32> to vector<2x64xf32>
    %279 = vector.extract_strided_slice %261 {offsets = [0, 128], sizes = [2, 64], strides = [1, 1]} : vector<2x192xf32> to vector<2x64xf32>
    %280 = arith.addf %279, %8 : vector<2x64xf32>
    %281 = arith.mulf %269, %280 : vector<2x64xf32>
    %282 = arith.addf %278, %281 : vector<2x64xf32>
    %283 = math.tanh %282 : vector<2x64xf32>
    %cst_69 = arith.constant 1.000000e+00 : f32
    %284 = vector.broadcast %cst_69 : f32 to vector<2x64xf32>
    %285 = arith.subf %284, %277 : vector<2x64xf32>
    %286 = arith.mulf %285, %283 : vector<2x64xf32>
    %287 = arith.mulf %277, %227 : vector<2x64xf32>
    %288 = arith.addf %286, %287 : vector<2x64xf32>
    %c6 = arith.constant 6 : index
    %c0_70 = arith.constant 0 : index
    %289 = vector.load %arg10[%c6, %c0_70] : memref<16x64xf32, #tpu.memory_space<vmem>>, vector<2x64xf32>
    tpu.vector_store %arg10[%c6, %c0_70], %288 {strides = array<i32>} : memref<16x64xf32, #tpu.memory_space<vmem>>, vector<2x64xf32>,
    %cst_71 = arith.constant dense<0.000000e+00> : vector<2x192xf32>
    %290 = tpu.matmul %258, %0, %cst_71 {dimension_numbers = #tpu.dot_dimension_numbers<[1], [0], [0], [1], [0, 0, 1, 1], [], []>} : vector<2x64xf32>, vector<64x192xf32>, vector<2x192xf32> -> vector<2x192xf32>
    %c5 = arith.constant 5 : index
    %c0_72 = arith.constant 0 : index
    %c0_73 = arith.constant 0 : index
    %291 = vector.load %arg0[%c5, %c0_72, %c0_73] : memref<8x2x192xf32, #tpu.memory_space<vmem>>, vector<1x2x192xf32>
    %292 = vector.shape_cast %291 : vector<1x2x192xf32> to vector<2x192xf32>
    %293 = vector.extract_strided_slice %292 {offsets = [0, 0], sizes = [2, 64], strides = [1, 1]} : vector<2x192xf32> to vector<2x64xf32>
    %294 = vector.extract_strided_slice %290 {offsets = [0, 0], sizes = [2, 64], strides = [1, 1]} : vector<2x192xf32> to vector<2x64xf32>
    %295 = arith.addf %293, %294 : vector<2x64xf32>
    %296 = arith.negf %295 : vector<2x64xf32>
    %297 = math.exp %296 : vector<2x64xf32>
    %cst_74 = arith.constant 1.000000e+00 : f32
    %298 = vector.broadcast %cst_74 : f32 to vector<2x64xf32>
    %299 = arith.addf %298, %297 : vector<2x64xf32>
    %300 = arith.divf %298, %299 : vector<2x64xf32>
    %301 = vector.extract_strided_slice %292 {offsets = [0, 64], sizes = [2, 64], strides = [1, 1]} : vector<2x192xf32> to vector<2x64xf32>
    %302 = vector.extract_strided_slice %290 {offsets = [0, 64], sizes = [2, 64], strides = [1, 1]} : vector<2x192xf32> to vector<2x64xf32>
    %303 = arith.addf %301, %302 : vector<2x64xf32>
    %304 = arith.negf %303 : vector<2x64xf32>
    %305 = math.exp %304 : vector<2x64xf32>
    %cst_75 = arith.constant 1.000000e+00 : f32
    %306 = vector.broadcast %cst_75 : f32 to vector<2x64xf32>
    %307 = arith.addf %306, %305 : vector<2x64xf32>
    %308 = arith.divf %306, %307 : vector<2x64xf32>
    %309 = vector.extract_strided_slice %292 {offsets = [0, 128], sizes = [2, 64], strides = [1, 1]} : vector<2x192xf32> to vector<2x64xf32>
    %310 = vector.extract_strided_slice %290 {offsets = [0, 128], sizes = [2, 64], strides = [1, 1]} : vector<2x192xf32> to vector<2x64xf32>
    %311 = arith.addf %310, %5 : vector<2x64xf32>
    %312 = arith.mulf %300, %311 : vector<2x64xf32>
    %313 = arith.addf %309, %312 : vector<2x64xf32>
    %314 = math.tanh %313 : vector<2x64xf32>
    %cst_76 = arith.constant 1.000000e+00 : f32
    %315 = vector.broadcast %cst_76 : f32 to vector<2x64xf32>
    %316 = arith.subf %315, %308 : vector<2x64xf32>
    %317 = arith.mulf %316, %314 : vector<2x64xf32>
    %318 = arith.mulf %308, %258 : vector<2x64xf32>
    %319 = arith.addf %317, %318 : vector<2x64xf32>
    %cst_77 = arith.constant dense<0.000000e+00> : vector<2x192xf32>
    %320 = tpu.matmul %319, %1, %cst_77 {dimension_numbers = #tpu.dot_dimension_numbers<[1], [0], [0], [1], [0, 0, 1, 1], [], []>} : vector<2x64xf32>, vector<64x192xf32>, vector<2x192xf32> -> vector<2x192xf32>
    %321 = arith.addf %320, %11 : vector<2x192xf32>
    %cst_78 = arith.constant dense<0.000000e+00> : vector<2x192xf32>
    %322 = tpu.matmul %288, %2, %cst_78 {dimension_numbers = #tpu.dot_dimension_numbers<[1], [0], [0], [1], [0, 0, 1, 1], [], []>} : vector<2x64xf32>, vector<64x192xf32>, vector<2x192xf32> -> vector<2x192xf32>
    %323 = vector.extract_strided_slice %260 {offsets = [0, 0], sizes = [2, 64], strides = [1, 1]} : vector<2x192xf32> to vector<2x64xf32>
    %324 = vector.extract_strided_slice %322 {offsets = [0, 0], sizes = [2, 64], strides = [1, 1]} : vector<2x192xf32> to vector<2x64xf32>
    %325 = arith.addf %323, %324 : vector<2x64xf32>
    %326 = arith.negf %325 : vector<2x64xf32>
    %327 = math.exp %326 : vector<2x64xf32>
    %cst_79 = arith.constant 1.000000e+00 : f32
    %328 = vector.broadcast %cst_79 : f32 to vector<2x64xf32>
    %329 = arith.addf %328, %327 : vector<2x64xf32>
    %330 = arith.divf %328, %329 : vector<2x64xf32>
    %331 = vector.extract_strided_slice %260 {offsets = [0, 64], sizes = [2, 64], strides = [1, 1]} : vector<2x192xf32> to vector<2x64xf32>
    %332 = vector.extract_strided_slice %322 {offsets = [0, 64], sizes = [2, 64], strides = [1, 1]} : vector<2x192xf32> to vector<2x64xf32>
    %333 = arith.addf %331, %332 : vector<2x64xf32>
    %334 = arith.negf %333 : vector<2x64xf32>
    %335 = math.exp %334 : vector<2x64xf32>
    %cst_80 = arith.constant 1.000000e+00 : f32
    %336 = vector.broadcast %cst_80 : f32 to vector<2x64xf32>
    %337 = arith.addf %336, %335 : vector<2x64xf32>
    %338 = arith.divf %336, %337 : vector<2x64xf32>
    %339 = vector.extract_strided_slice %260 {offsets = [0, 128], sizes = [2, 64], strides = [1, 1]} : vector<2x192xf32> to vector<2x64xf32>
    %340 = vector.extract_strided_slice %322 {offsets = [0, 128], sizes = [2, 64], strides = [1, 1]} : vector<2x192xf32> to vector<2x64xf32>
    %341 = arith.addf %340, %8 : vector<2x64xf32>
    %342 = arith.mulf %330, %341 : vector<2x64xf32>
    %343 = arith.addf %339, %342 : vector<2x64xf32>
    %344 = math.tanh %343 : vector<2x64xf32>
    %cst_81 = arith.constant 1.000000e+00 : f32
    %345 = vector.broadcast %cst_81 : f32 to vector<2x64xf32>
    %346 = arith.subf %345, %338 : vector<2x64xf32>
    %347 = arith.mulf %346, %344 : vector<2x64xf32>
    %348 = arith.mulf %338, %288 : vector<2x64xf32>
    %349 = arith.addf %347, %348 : vector<2x64xf32>
    %c8 = arith.constant 8 : index
    %c0_82 = arith.constant 0 : index
    %350 = vector.load %arg10[%c8, %c0_82] : memref<16x64xf32, #tpu.memory_space<vmem>>, vector<2x64xf32>
    tpu.vector_store %arg10[%c8, %c0_82], %349 {strides = array<i32>} : memref<16x64xf32, #tpu.memory_space<vmem>>, vector<2x64xf32>,
    %cst_83 = arith.constant dense<0.000000e+00> : vector<2x192xf32>
    %351 = tpu.matmul %319, %0, %cst_83 {dimension_numbers = #tpu.dot_dimension_numbers<[1], [0], [0], [1], [0, 0, 1, 1], [], []>} : vector<2x64xf32>, vector<64x192xf32>, vector<2x192xf32> -> vector<2x192xf32>
    %c6_84 = arith.constant 6 : index
    %c0_85 = arith.constant 0 : index
    %c0_86 = arith.constant 0 : index
    %352 = vector.load %arg0[%c6_84, %c0_85, %c0_86] : memref<8x2x192xf32, #tpu.memory_space<vmem>>, vector<1x2x192xf32>
    %353 = vector.shape_cast %352 : vector<1x2x192xf32> to vector<2x192xf32>
    %354 = vector.extract_strided_slice %353 {offsets = [0, 0], sizes = [2, 64], strides = [1, 1]} : vector<2x192xf32> to vector<2x64xf32>
    %355 = vector.extract_strided_slice %351 {offsets = [0, 0], sizes = [2, 64], strides = [1, 1]} : vector<2x192xf32> to vector<2x64xf32>
    %356 = arith.addf %354, %355 : vector<2x64xf32>
    %357 = arith.negf %356 : vector<2x64xf32>
    %358 = math.exp %357 : vector<2x64xf32>
    %cst_87 = arith.constant 1.000000e+00 : f32
    %359 = vector.broadcast %cst_87 : f32 to vector<2x64xf32>
    %360 = arith.addf %359, %358 : vector<2x64xf32>
    %361 = arith.divf %359, %360 : vector<2x64xf32>
    %362 = vector.extract_strided_slice %353 {offsets = [0, 64], sizes = [2, 64], strides = [1, 1]} : vector<2x192xf32> to vector<2x64xf32>
    %363 = vector.extract_strided_slice %351 {offsets = [0, 64], sizes = [2, 64], strides = [1, 1]} : vector<2x192xf32> to vector<2x64xf32>
    %364 = arith.addf %362, %363 : vector<2x64xf32>
    %365 = arith.negf %364 : vector<2x64xf32>
    %366 = math.exp %365 : vector<2x64xf32>
    %cst_88 = arith.constant 1.000000e+00 : f32
    %367 = vector.broadcast %cst_88 : f32 to vector<2x64xf32>
    %368 = arith.addf %367, %366 : vector<2x64xf32>
    %369 = arith.divf %367, %368 : vector<2x64xf32>
    %370 = vector.extract_strided_slice %353 {offsets = [0, 128], sizes = [2, 64], strides = [1, 1]} : vector<2x192xf32> to vector<2x64xf32>
    %371 = vector.extract_strided_slice %351 {offsets = [0, 128], sizes = [2, 64], strides = [1, 1]} : vector<2x192xf32> to vector<2x64xf32>
    %372 = arith.addf %371, %5 : vector<2x64xf32>
    %373 = arith.mulf %361, %372 : vector<2x64xf32>
    %374 = arith.addf %370, %373 : vector<2x64xf32>
    %375 = math.tanh %374 : vector<2x64xf32>
    %cst_89 = arith.constant 1.000000e+00 : f32
    %376 = vector.broadcast %cst_89 : f32 to vector<2x64xf32>
    %377 = arith.subf %376, %369 : vector<2x64xf32>
    %378 = arith.mulf %377, %375 : vector<2x64xf32>
    %379 = arith.mulf %369, %319 : vector<2x64xf32>
    %380 = arith.addf %378, %379 : vector<2x64xf32>
    %cst_90 = arith.constant dense<0.000000e+00> : vector<2x192xf32>
    %381 = tpu.matmul %380, %1, %cst_90 {dimension_numbers = #tpu.dot_dimension_numbers<[1], [0], [0], [1], [0, 0, 1, 1], [], []>} : vector<2x64xf32>, vector<64x192xf32>, vector<2x192xf32> -> vector<2x192xf32>
    %382 = arith.addf %381, %11 : vector<2x192xf32>
    %cst_91 = arith.constant dense<0.000000e+00> : vector<2x192xf32>
    %383 = tpu.matmul %349, %2, %cst_91 {dimension_numbers = #tpu.dot_dimension_numbers<[1], [0], [0], [1], [0, 0, 1, 1], [], []>} : vector<2x64xf32>, vector<64x192xf32>, vector<2x192xf32> -> vector<2x192xf32>
    %384 = vector.extract_strided_slice %321 {offsets = [0, 0], sizes = [2, 64], strides = [1, 1]} : vector<2x192xf32> to vector<2x64xf32>
    %385 = vector.extract_strided_slice %383 {offsets = [0, 0], sizes = [2, 64], strides = [1, 1]} : vector<2x192xf32> to vector<2x64xf32>
    %386 = arith.addf %384, %385 : vector<2x64xf32>
    %387 = arith.negf %386 : vector<2x64xf32>
    %388 = math.exp %387 : vector<2x64xf32>
    %cst_92 = arith.constant 1.000000e+00 : f32
    %389 = vector.broadcast %cst_92 : f32 to vector<2x64xf32>
    %390 = arith.addf %389, %388 : vector<2x64xf32>
    %391 = arith.divf %389, %390 : vector<2x64xf32>
    %392 = vector.extract_strided_slice %321 {offsets = [0, 64], sizes = [2, 64], strides = [1, 1]} : vector<2x192xf32> to vector<2x64xf32>
    %393 = vector.extract_strided_slice %383 {offsets = [0, 64], sizes = [2, 64], strides = [1, 1]} : vector<2x192xf32> to vector<2x64xf32>
    %394 = arith.addf %392, %393 : vector<2x64xf32>
    %395 = arith.negf %394 : vector<2x64xf32>
    %396 = math.exp %395 : vector<2x64xf32>
    %cst_93 = arith.constant 1.000000e+00 : f32
    %397 = vector.broadcast %cst_93 : f32 to vector<2x64xf32>
    %398 = arith.addf %397, %396 : vector<2x64xf32>
    %399 = arith.divf %397, %398 : vector<2x64xf32>
    %400 = vector.extract_strided_slice %321 {offsets = [0, 128], sizes = [2, 64], strides = [1, 1]} : vector<2x192xf32> to vector<2x64xf32>
    %401 = vector.extract_strided_slice %383 {offsets = [0, 128], sizes = [2, 64], strides = [1, 1]} : vector<2x192xf32> to vector<2x64xf32>
    %402 = arith.addf %401, %8 : vector<2x64xf32>
    %403 = arith.mulf %391, %402 : vector<2x64xf32>
    %404 = arith.addf %400, %403 : vector<2x64xf32>
    %405 = math.tanh %404 : vector<2x64xf32>
    %cst_94 = arith.constant 1.000000e+00 : f32
    %406 = vector.broadcast %cst_94 : f32 to vector<2x64xf32>
    %407 = arith.subf %406, %399 : vector<2x64xf32>
    %408 = arith.mulf %407, %405 : vector<2x64xf32>
    %409 = arith.mulf %399, %349 : vector<2x64xf32>
    %410 = arith.addf %408, %409 : vector<2x64xf32>
    %c10 = arith.constant 10 : index
    %c0_95 = arith.constant 0 : index
    %411 = vector.load %arg10[%c10, %c0_95] : memref<16x64xf32, #tpu.memory_space<vmem>>, vector<2x64xf32>
    tpu.vector_store %arg10[%c10, %c0_95], %410 {strides = array<i32>} : memref<16x64xf32, #tpu.memory_space<vmem>>, vector<2x64xf32>,
    %cst_96 = arith.constant dense<0.000000e+00> : vector<2x192xf32>
    %412 = tpu.matmul %380, %0, %cst_96 {dimension_numbers = #tpu.dot_dimension_numbers<[1], [0], [0], [1], [0, 0, 1, 1], [], []>} : vector<2x64xf32>, vector<64x192xf32>, vector<2x192xf32> -> vector<2x192xf32>
    %c7 = arith.constant 7 : index
    %c0_97 = arith.constant 0 : index
    %c0_98 = arith.constant 0 : index
    %413 = vector.load %arg0[%c7, %c0_97, %c0_98] : memref<8x2x192xf32, #tpu.memory_space<vmem>>, vector<1x2x192xf32>
    %414 = vector.shape_cast %413 : vector<1x2x192xf32> to vector<2x192xf32>
    %415 = vector.extract_strided_slice %414 {offsets = [0, 0], sizes = [2, 64], strides = [1, 1]} : vector<2x192xf32> to vector<2x64xf32>
    %416 = vector.extract_strided_slice %412 {offsets = [0, 0], sizes = [2, 64], strides = [1, 1]} : vector<2x192xf32> to vector<2x64xf32>
    %417 = arith.addf %415, %416 : vector<2x64xf32>
    %418 = arith.negf %417 : vector<2x64xf32>
    %419 = math.exp %418 : vector<2x64xf32>
    %cst_99 = arith.constant 1.000000e+00 : f32
    %420 = vector.broadcast %cst_99 : f32 to vector<2x64xf32>
    %421 = arith.addf %420, %419 : vector<2x64xf32>
    %422 = arith.divf %420, %421 : vector<2x64xf32>
    %423 = vector.extract_strided_slice %414 {offsets = [0, 64], sizes = [2, 64], strides = [1, 1]} : vector<2x192xf32> to vector<2x64xf32>
    %424 = vector.extract_strided_slice %412 {offsets = [0, 64], sizes = [2, 64], strides = [1, 1]} : vector<2x192xf32> to vector<2x64xf32>
    %425 = arith.addf %423, %424 : vector<2x64xf32>
    %426 = arith.negf %425 : vector<2x64xf32>
    %427 = math.exp %426 : vector<2x64xf32>
    %cst_100 = arith.constant 1.000000e+00 : f32
    %428 = vector.broadcast %cst_100 : f32 to vector<2x64xf32>
    %429 = arith.addf %428, %427 : vector<2x64xf32>
    %430 = arith.divf %428, %429 : vector<2x64xf32>
    %431 = vector.extract_strided_slice %414 {offsets = [0, 128], sizes = [2, 64], strides = [1, 1]} : vector<2x192xf32> to vector<2x64xf32>
    %432 = vector.extract_strided_slice %412 {offsets = [0, 128], sizes = [2, 64], strides = [1, 1]} : vector<2x192xf32> to vector<2x64xf32>
    %433 = arith.addf %432, %5 : vector<2x64xf32>
    %434 = arith.mulf %422, %433 : vector<2x64xf32>
    %435 = arith.addf %431, %434 : vector<2x64xf32>
    %436 = math.tanh %435 : vector<2x64xf32>
    %cst_101 = arith.constant 1.000000e+00 : f32
    %437 = vector.broadcast %cst_101 : f32 to vector<2x64xf32>
    %438 = arith.subf %437, %430 : vector<2x64xf32>
    %439 = arith.mulf %438, %436 : vector<2x64xf32>
    %440 = arith.mulf %430, %380 : vector<2x64xf32>
    %441 = arith.addf %439, %440 : vector<2x64xf32>
    %cst_102 = arith.constant dense<0.000000e+00> : vector<2x192xf32>
    %442 = tpu.matmul %441, %1, %cst_102 {dimension_numbers = #tpu.dot_dimension_numbers<[1], [0], [0], [1], [0, 0, 1, 1], [], []>} : vector<2x64xf32>, vector<64x192xf32>, vector<2x192xf32> -> vector<2x192xf32>
    %443 = arith.addf %442, %11 : vector<2x192xf32>
    %cst_103 = arith.constant dense<0.000000e+00> : vector<2x192xf32>
    %444 = tpu.matmul %410, %2, %cst_103 {dimension_numbers = #tpu.dot_dimension_numbers<[1], [0], [0], [1], [0, 0, 1, 1], [], []>} : vector<2x64xf32>, vector<64x192xf32>, vector<2x192xf32> -> vector<2x192xf32>
    %445 = vector.extract_strided_slice %382 {offsets = [0, 0], sizes = [2, 64], strides = [1, 1]} : vector<2x192xf32> to vector<2x64xf32>
    %446 = vector.extract_strided_slice %444 {offsets = [0, 0], sizes = [2, 64], strides = [1, 1]} : vector<2x192xf32> to vector<2x64xf32>
    %447 = arith.addf %445, %446 : vector<2x64xf32>
    %448 = arith.negf %447 : vector<2x64xf32>
    %449 = math.exp %448 : vector<2x64xf32>
    %cst_104 = arith.constant 1.000000e+00 : f32
    %450 = vector.broadcast %cst_104 : f32 to vector<2x64xf32>
    %451 = arith.addf %450, %449 : vector<2x64xf32>
    %452 = arith.divf %450, %451 : vector<2x64xf32>
    %453 = vector.extract_strided_slice %382 {offsets = [0, 64], sizes = [2, 64], strides = [1, 1]} : vector<2x192xf32> to vector<2x64xf32>
    %454 = vector.extract_strided_slice %444 {offsets = [0, 64], sizes = [2, 64], strides = [1, 1]} : vector<2x192xf32> to vector<2x64xf32>
    %455 = arith.addf %453, %454 : vector<2x64xf32>
    %456 = arith.negf %455 : vector<2x64xf32>
    %457 = math.exp %456 : vector<2x64xf32>
    %cst_105 = arith.constant 1.000000e+00 : f32
    %458 = vector.broadcast %cst_105 : f32 to vector<2x64xf32>
    %459 = arith.addf %458, %457 : vector<2x64xf32>
    %460 = arith.divf %458, %459 : vector<2x64xf32>
    %461 = vector.extract_strided_slice %382 {offsets = [0, 128], sizes = [2, 64], strides = [1, 1]} : vector<2x192xf32> to vector<2x64xf32>
    %462 = vector.extract_strided_slice %444 {offsets = [0, 128], sizes = [2, 64], strides = [1, 1]} : vector<2x192xf32> to vector<2x64xf32>
    %463 = arith.addf %462, %8 : vector<2x64xf32>
    %464 = arith.mulf %452, %463 : vector<2x64xf32>
    %465 = arith.addf %461, %464 : vector<2x64xf32>
    %466 = math.tanh %465 : vector<2x64xf32>
    %cst_106 = arith.constant 1.000000e+00 : f32
    %467 = vector.broadcast %cst_106 : f32 to vector<2x64xf32>
    %468 = arith.subf %467, %460 : vector<2x64xf32>
    %469 = arith.mulf %468, %466 : vector<2x64xf32>
    %470 = arith.mulf %460, %410 : vector<2x64xf32>
    %471 = arith.addf %469, %470 : vector<2x64xf32>
    %c12 = arith.constant 12 : index
    %c0_107 = arith.constant 0 : index
    %472 = vector.load %arg10[%c12, %c0_107] : memref<16x64xf32, #tpu.memory_space<vmem>>, vector<2x64xf32>
    tpu.vector_store %arg10[%c12, %c0_107], %471 {strides = array<i32>} : memref<16x64xf32, #tpu.memory_space<vmem>>, vector<2x64xf32>,
    %cst_108 = arith.constant dense<0.000000e+00> : vector<2x192xf32>
    %473 = tpu.matmul %471, %2, %cst_108 {dimension_numbers = #tpu.dot_dimension_numbers<[1], [0], [0], [1], [0, 0, 1, 1], [], []>} : vector<2x64xf32>, vector<64x192xf32>, vector<2x192xf32> -> vector<2x192xf32>
    %474 = vector.extract_strided_slice %443 {offsets = [0, 0], sizes = [2, 64], strides = [1, 1]} : vector<2x192xf32> to vector<2x64xf32>
    %475 = vector.extract_strided_slice %473 {offsets = [0, 0], sizes = [2, 64], strides = [1, 1]} : vector<2x192xf32> to vector<2x64xf32>
    %476 = arith.addf %474, %475 : vector<2x64xf32>
    %477 = arith.negf %476 : vector<2x64xf32>
    %478 = math.exp %477 : vector<2x64xf32>
    %cst_109 = arith.constant 1.000000e+00 : f32
    %479 = vector.broadcast %cst_109 : f32 to vector<2x64xf32>
    %480 = arith.addf %479, %478 : vector<2x64xf32>
    %481 = arith.divf %479, %480 : vector<2x64xf32>
    %482 = vector.extract_strided_slice %443 {offsets = [0, 64], sizes = [2, 64], strides = [1, 1]} : vector<2x192xf32> to vector<2x64xf32>
    %483 = vector.extract_strided_slice %473 {offsets = [0, 64], sizes = [2, 64], strides = [1, 1]} : vector<2x192xf32> to vector<2x64xf32>
    %484 = arith.addf %482, %483 : vector<2x64xf32>
    %485 = arith.negf %484 : vector<2x64xf32>
    %486 = math.exp %485 : vector<2x64xf32>
    %cst_110 = arith.constant 1.000000e+00 : f32
    %487 = vector.broadcast %cst_110 : f32 to vector<2x64xf32>
    %488 = arith.addf %487, %486 : vector<2x64xf32>
    %489 = arith.divf %487, %488 : vector<2x64xf32>
    %490 = vector.extract_strided_slice %443 {offsets = [0, 128], sizes = [2, 64], strides = [1, 1]} : vector<2x192xf32> to vector<2x64xf32>
    %491 = vector.extract_strided_slice %473 {offsets = [0, 128], sizes = [2, 64], strides = [1, 1]} : vector<2x192xf32> to vector<2x64xf32>
    %492 = arith.addf %491, %8 : vector<2x64xf32>
    %493 = arith.mulf %481, %492 : vector<2x64xf32>
    %494 = arith.addf %490, %493 : vector<2x64xf32>
    %495 = math.tanh %494 : vector<2x64xf32>
    %cst_111 = arith.constant 1.000000e+00 : f32
    %496 = vector.broadcast %cst_111 : f32 to vector<2x64xf32>
    %497 = arith.subf %496, %489 : vector<2x64xf32>
    %498 = arith.mulf %497, %495 : vector<2x64xf32>
    %499 = arith.mulf %489, %471 : vector<2x64xf32>
    %500 = arith.addf %498, %499 : vector<2x64xf32>
    %c14 = arith.constant 14 : index
    %c0_112 = arith.constant 0 : index
    %501 = vector.load %arg10[%c14, %c0_112] : memref<16x64xf32, #tpu.memory_space<vmem>>, vector<2x64xf32>
    tpu.vector_store %arg10[%c14, %c0_112], %500 {strides = array<i32>} : memref<16x64xf32, #tpu.memory_space<vmem>>, vector<2x64xf32>,
    %c0_113 = arith.constant 0 : index
    %c0_114 = arith.constant 0 : index
    %502 = vector.load %arg10[%c0_113, %c0_114] : memref<16x64xf32, #tpu.memory_space<vmem>>, vector<16x64xf32>
    %c0_115 = arith.constant 0 : index
    %c0_116 = arith.constant 0 : index
    %503 = vector.load %arg7[%c0_115, %c0_116] : memref<64x128xf32, #tpu.memory_space<vmem>>, vector<64x128xf32>
    %cst_117 = arith.constant dense<0.000000e+00> : vector<16x128xf32>
    %504 = tpu.matmul %502, %503, %cst_117 {dimension_numbers = #tpu.dot_dimension_numbers<[1], [0], [0], [1], [0, 0, 1, 1], [], []>} : vector<16x64xf32>, vector<64x128xf32>, vector<16x128xf32> -> vector<16x128xf32>
    %c0_118 = arith.constant 0 : index
    %c0_119 = arith.constant 0 : index
    %505 = vector.load %arg8[%c0_118, %c0_119] : memref<1x128xf32, #tpu.memory_space<vmem>>, vector<1x128xf32>
    %506 = vector.broadcast %505 : vector<1x128xf32> to vector<16x128xf32>
    %507 = arith.addf %504, %506 : vector<16x128xf32>
    %c0_120 = arith.constant 0 : index
    %c0_121 = arith.constant 0 : index
    %508 = vector.load %arg9[%c0_120, %c0_121] : memref<16x128xf32, #tpu.memory_space<vmem>>, vector<16x128xf32>
    tpu.vector_store %arg9[%c0_120, %c0_121], %507 {strides = array<i32>} : memref<16x128xf32, #tpu.memory_space<vmem>>, vector<16x128xf32>,
    return
  }
}

</mosaic_0001>

<bundles_post_ra>
// kernel: my_adv_rnn_forward.1
= control target key start
LH: loop header
LB: loop body
LE: loop exit
PB: predicated region body
PF: predicated region fallthrough
CT: control target
= control target key end

     0   :  { %v3844_v3 = vmov 0.0   ;;  %s2641_s21 = smov 64   ;;  %v96_v48 = vlaneseq  ;;  %v2642_v49 = vmov 1983009808   ;;  %vm106_vm0 = vcmask 523264   ;;  %s3834_s1 = inlined_call_operand.vmem [shape: f32[64,192], index: 1, kind: input, shape index: {}]   ;;  %s3835_s0 = inlined_call_operand.vmem [shape: f32[8,2,192], index: 0, kind: input, shape index: {}]   ;;  %s3836_s2 = inlined_call_operand.vmem [shape: f32[1,64], index: 2, kind: input, shape index: {}]   ;;  %s3837_s3 = inlined_call_operand.vmem [shape: f32[64,192], index: 3, kind: input, shape index: {}]   ;;  %s3838_s4 = inlined_call_operand.vmem [shape: f32[64,192], index: 4, kind: input, shape index: {}]   ;;  %s3839_s5 = inlined_call_operand.vmem [shape: f32[1,192], index: 5, kind: input, shape index: {}]   ;;  %s3840_s6 = inlined_call_operand.vmem [shape: f32[1,64], index: 6, kind: input, shape index: {}]   ;;  %s3841_s7 = inlined_call_operand.vmem [shape: f32[64,128], index: 7, kind: input, shape index: {}]   ;;  %s3842_s8 = inlined_call_operand.vmem [shape: f32[1,128], index: 8, kind: input, shape index: {}]   ;;  %s3843_s9 = inlined_call_operand.vmem [shape: f32[16,128], index: 9, kind: output, shape index: {}]  }
   0x1   :  { %v2696_v0 = vld [vmem:[%s3834_s1 + $0x78] sm:$0xff]  ;;  %v2701_v1 = vld [vmem:[%s3834_s1 + $0x70] sm:$0xff]  ;;  %v2706_v2 = vld [vmem:[%s3834_s1 + $0x68] sm:$0xff]  ;;  %174 = vmatprep.mubr.f32.mxu0 %v3844_v3  ;;  %280 = vmatprep.mubr.f32.mxu1 %v3844_v3  ;;  %v206_v50 = vunpack.c.l.s4 %v2642_v49  ;;  %vm559_vm1 = vcmask 517120  }
   0x2   :  { %3868 = vst [vmem:[#allocation3_spill] sm:$0xff] %v2696_v0  ;;  %126 = vmatprep.subr.mxu0 %v2696_v0  ;;  %v2714_v4 = vld [vmem:[%s3834_s1 + $0x60] sm:$0xff]  ;;  %v2720_v5 = vld [vmem:[%s3834_s1 + $0x58] sm:$0xff]  ;;  %v2726_v6 = vld [vmem:[%s3834_s1 + $0x50] sm:$0xff]  ;;  %v2922_v51 = vshrl.u32 %v96_v48, 7 }
   0x3   :  { %127 = vmatpush1.msra.mxu0 %v2701_v1  ;;  %v2732_v7 = vld [vmem:[%s3834_s1 + $0x48] sm:$0xff]  ;;  %v2738_v8 = vld [vmem:[%s3834_s1 + $0x40] sm:$0xff]  ;;  %v2744_v9 = vld [vmem:[%s3834_s1 + $0x38] sm:$0xff]  ;;  %v207_v52 = vunpack.c.0.s8 %v206_v50 }
   0x4   :  { %128 = vmatprep.subr.mxu0 %v2706_v2  ;;  %v2750_v10 = vld [vmem:[%s3834_s1 + $0x30] sm:$0xff]  ;;  %v2756_v11 = vld [vmem:[%s3834_s1 + $0x28] sm:$0xff]  ;;  %v2762_v12 = vld [vmem:[%s3834_s1 + $0x20] sm:$0xff] }
   0x5   :  { %129 = vmatpush1.msra.mxu0 %v2714_v4  ;;  %v2768_v13 = vld [vmem:[%s3834_s1 + $0x18] sm:$0xff]  ;;  %v2774_v14 = vld [vmem:[%s3834_s1 + $0x10] sm:$0xff]  ;;  %v2780_v15 = vld [vmem:[%s3834_s1 + $0x8] sm:$0xff]  ;;  %v2925_v57 = vsub.s32 %v207_v52, %v2922_v51  ;;  %v98_v52 = vsub.s32 0, %v2922_v51 }
   0x6   :  { %130 = vmatprep.subr.mxu0 %v2720_v5  ;;  %v2786_v16 = vld [vmem:[%s3834_s1] sm:$0xff]  ;;  %v2821_v30 = vld [vmem:[%s3837_s3 + $0x78] sm:$0xff]  ;;  %v2826_v31 = vld [vmem:[%s3837_s3 + $0x70] sm:$0xff] }
   0x7   :  { %131 = vmatpush1.msra.mxu0 %v2726_v6  ;;  %v181_v17 = vld [vmem:[%s3835_s0] sm:$0xf]  ;;  %v2831_v32 = vld [vmem:[%s3837_s3 + $0x68] sm:$0xff]  ;;  %232 = vmatprep.subr.mxu1 %v2821_v30  ;;  %v2843_v34 = vld [vmem:[%s3837_s3 + $0x58] sm:$0xff] }
   0x8   :  { %132 = vmatprep.subr.mxu0 %v2732_v7  ;;  %v2815_v23 = vld [vmem:[%s3836_s2] ss:$0 sm:$0xff]  ;;  %v192_v25 = vrot.slane %v181_v17, 2  ;;  %233 = vmatpush1.msra.mxu1 %v2826_v31  ;;  %v2849_v35 = vld [vmem:[%s3837_s3 + $0x50] sm:$0xff]  ;;  %v2855_v36 = vld [vmem:[%s3837_s3 + $0x48] sm:$0xff] }
   0x9   :  { %133 = vmatpush1.msra.mxu0 %v2738_v8  ;;  %v2837_v33 = vld [vmem:[%s3837_s3 + $0x60] sm:$0xff]  ;;  %234 = vmatprep.subr.mxu1 %v2831_v32  ;;  %3869 = vst [vmem:[#allocation4_spill] sm:$0xff] %v2855_v36  ;;  %v2866_v39 = vld [vmem:[%s3838_s4 + $0x78] sm:$0xff]  ;;  %v2879_v41 = vld [vmem:[%s3837_s3 + $0x30] sm:$0xff] }
   0xa   :  { %134 = vmatprep.subr.mxu0 %v2744_v9  ;;  %235 = vmatpush1.msra.mxu1 %v2837_v33  ;;  %v2861_v38 = vld [vmem:[%s3837_s3 + $0x40] sm:$0xff]  ;;  %v2873_v40 = vld [vmem:[%s3837_s3 + $0x38] sm:$0xff]  ;;  %3872 = vst [vmem:[#allocation7_spill] sm:$0xff] %v2879_v41  ;;  %v2886_v42 = vld [vmem:[%s3837_s3 + $0x28] sm:$0xff] }
   0xb   :  { %135 = vmatpush1.msra.mxu0 %v2750_v10  ;;  %236 = vmatprep.subr.mxu1 %v2843_v34  ;;  %3870 = vst [vmem:[#allocation5_spill] sm:$0xff] %v2861_v38  ;;  %3871 = vst [vmem:[#allocation6_spill] sm:$0xff] %v2873_v40  ;;  %v2892_v43 = vld [vmem:[%s3837_s3 + $0x20] sm:$0xff]  ;;  %v2898_v44 = vld [vmem:[%s3837_s3 + $0x18] sm:$0xff] }
   0xc   :  { %136 = vmatprep.subr.mxu0 %v2756_v11  ;;  %237 = vmatpush1.msra.mxu1 %v2849_v35  ;;  %3873 = vst [vmem:[#allocation8_spill] sm:$0xff] %v2886_v42  ;;  %3874 = vst [vmem:[#allocation9_spill] sm:$0xff] %v2892_v43  ;;  %v2904_v45 = vld [vmem:[%s3837_s3 + $0x10] sm:$0xff]  ;;  %v2910_v46 = vld [vmem:[%s3837_s3 + $0x8] sm:$0xff] }
   0xd   :  { %137 = vmatpush1.msra.mxu0 %v2762_v12  ;;  %238 = vmatprep.subr.mxu1 %v2855_v36  ;;  %3875 = vst [vmem:[#allocation10_spill] sm:$0xff] %v2898_v44  ;;  %3876 = vst [vmem:[#allocation11_spill] sm:$0xff] %v2904_v45  ;;  %v2916_v47 = vld [vmem:[%s3837_s3] sm:$0xff]  ;;  %v2935_v60 = vld [vmem:[%s3838_s4 + $0x70] sm:$0xff] }
   0xe   :  { %138 = vmatprep.subr.mxu0 %v2768_v13  ;;  %239 = vmatpush1.msra.mxu1 %v2861_v38  ;;  %3877 = vst [vmem:[#allocation12_spill] sm:$0xff] %v2910_v46  ;;  %3878 = vst [vmem:[#allocation13_spill] sm:$0xff] %v2916_v47  ;;  %v2940_v62 = vld [vmem:[%s3838_s4 + $0x68] sm:$0xff]  ;;  %v2947_v63 = vld [vmem:[%s3838_s4 + $0x60] sm:$0xff] }
   0xf   :  { %139 = vmatpush1.msra.mxu0 %v2774_v14  ;;  %240 = vmatprep.subr.mxu1 %v2873_v40 }
  0x10   :  { %140 = vmatprep.subr.mxu0 %v2780_v15  ;;  %241 = vmatpush1.msra.mxu1 %v2879_v41 }
  0x11   :  { %141 = vmatpush1.msra.mxu0 %v2786_v16  ;;  %242 = vmatprep.subr.mxu1 %v2886_v42 }
  0x12   :  { %175 = vmatmul.mubr.f32.vlgmr.msra.gmra.mxu0 %v3844_v3  ;;  %303 = vmatprep.subr.mxu0 %v2696_v0 }
  0x13   :  { %304 = vmatpush1.msra.mxu0 %v2701_v1  ;;  %351 = vmatprep.mubr.f32.mxu0 %v3844_v3 }
  0x14   :  { %305 = vmatprep.subr.mxu0 %v2706_v2  ;;  %243 = vmatpush1.msra.mxu1 %v2892_v43 }
  0x15   :  { %306 = vmatpush1.msra.mxu0 %v2714_v4  ;;  %244 = vmatprep.subr.mxu1 %v2898_v44 }
  0x16   :  { %307 = vmatprep.subr.mxu0 %v2720_v5  ;;  %245 = vmatpush1.msra.mxu1 %v2904_v45 }
  0x17   :  { %308 = vmatpush1.msra.mxu0 %v2726_v6  ;;  %246 = vmatprep.subr.mxu1 %v2910_v46 }
  0x18   :  { %309 = vmatprep.subr.mxu0 %v2732_v7  ;;  %247 = vmatpush1.msra.mxu1 %v2916_v47 }
  0x19   :  { %310 = vmatpush1.msra.mxu0 %v2738_v8  ;;  %410 = vmatprep.subr.mxu1 %v2821_v30 }
  0x1a   :  { %311 = vmatprep.subr.mxu0 %v2744_v9 }
  0x1b   :  { %312 = vmatpush1.msra.mxu0 %v2750_v10 }
  0x1c   :  { %313 = vmatprep.subr.mxu0 %v2756_v11 }
  0x1d   :  { %314 = vmatpush1.msra.mxu0 %v2762_v12 }
  0x1e   :  { %315 = vmatprep.subr.mxu0 %v2768_v13 }
  0x1f   :  { %316 = vmatpush1.msra.mxu0 %v2774_v14 }
  0x20   :  { %317 = vmatprep.subr.mxu0 %v2780_v15 }
  0x21   :  { %318 = vmatpush1.msra.mxu0 %v2786_v16 }
  0x22   :  { %481 = vmatprep.subr.mxu0 %v2866_v39 }
  0xd2   :  { %v176_v18 = vpop.f32.mrf.mxu0 }
  0xd3   :  { %v182_v19 = vadd.f32 %v181_v17, %v176_v18  ;;  %v2953_v17 = vld [vmem:[%s3838_s4 + $0x58] sm:$0xff]  ;;  %v2960_v18 = vld [vmem:[%s3838_s4 + $0x50] sm:$0xff] }
  0xd4   :  { %v178_v24 = vpop.f32.mrf.mxu0 }
  0xd5   :  { %v2414_v20 = vmul.f32 -1.442695, %v182_v19  ;;  %v189_v26 = vadd.f32 %v2815_v23, %v178_v24  ;;  %v2967_v19 = vld [vmem:[%s3838_s4 + $0x48] sm:$0xff] }
  0xd6   :  { %v2995_v24 = vld [vmem:[%s3838_s4 + $0x28] sm:$0xff] }
  0xd7   :  { %2494 = vpow2.f32 %v2414_v20  ;;  %v2974_v20 = vld [vmem:[%s3838_s4 + $0x40] sm:$0xff] }
  0xe4   :  { %v2495_v21 = vpop.eup %2494 }
  0xe5   :  { %v186_v22 = vadd.f32 1.0, %v2495_v21  ;;  %v2981_v21 = vld [vmem:[%s3838_s4 + $0x38] sm:$0xff] }
  0xe7   :  { %2496 = vrcp.f32 %v186_v22  ;;  %v2988_v22 = vld [vmem:[%s3838_s4 + $0x30] sm:$0xff] }
  0xf4   :  { %v2497_v27 = vpop.eup %2496 }
  0xf5   :  { %v190_v28 = vmul.f32 %v2497_v27, %v189_v26  ;;  %v196_v53 = vsub.f32 1.0, %v2497_v27  ;;  %v202_v55 = vmul.f32 0.0, %v2497_v27  ;;  %v3009_v26 = vld [vmem:[%s3838_s4 + $0x18] sm:$0xff]  ;;  %v3016_v27 = vld [vmem:[%s3838_s4 + $0x10] sm:$0xff] }
  0xf7   :  { %v194_v29 = vadd.f32 %v192_v25, %v190_v28  ;;  %v3002_v25 = vld [vmem:[%s3838_s4 + $0x20] sm:$0xff]  ;;  %v3023_v28 = vld [vmem:[%s3838_s4 + $0x8] sm:$0xff] }
  0xf9   :  { %2498 = vtanh.f32 %v194_v29  ;;  %v3030_v29 = vld [vmem:[%s3838_s4] sm:$0xff] }
 0x106   :  { %v2499_v37 = vpop.eup %2498 }
 0x107   :  { %198 = vrot.lane.b32.xlu0 %v2499_v37, %s2641_s21  ;;  %v2417_v37 = vld [vmem:[%s3835_s0 + $0x4] sm:$0xf] }
 0x179   :  { %v199_v54 = vpop.permute.xlu0 %198 }
 0x17a   :  { %v201_v56 = vmul.f32 %v199_v54, %v196_v53  ;;  %v94_v53 = vld [vmem:[%s3839_s5] sm:$0x3] }
 0x17b   :  { %v3068_v54 = vrot.slane %v94_v53, %v98_v52 }
 0x17c   :  { %v2927_v58 = vadd.f32 %v202_v55, %v201_v56 }
 0x17e   :  { %v211_v59 = vrot.slane %v2927_v58, %v2925_v57 }
 0x180   :  { %212 = vrot.lane.b32.xlu0 %v211_v59, %s2641_s21 }
 0x1f2   :  { %v213_v61 = vpop.permute.xlu0 %212 }
 0x1f3   :  { %2415 = vmatmul.mubr.msk.f32.vlgmr.msra.gmra.mxu1 %vm106_vm0, %v213_v61  ;;  %2416 = vmatmul.mubr.msk.f32.vlgmr.msra.gmra.mxu0 %vm106_vm0, %v213_v61 }
 0x1f4   :  { %482 = vmatpush1.msra.mxu0 %v2935_v60  ;;  %529 = vmatprep.mubr.f32.mxu0 %v3844_v3 }
 0x1f5   :  { %483 = vmatprep.subr.mxu0 %v2940_v62  ;;  %411 = vmatpush1.msra.mxu1 %v2826_v31 }
 0x1f6   :  { %484 = vmatpush1.msra.mxu0 %v2947_v63  ;;  %412 = vmatprep.subr.mxu1 %v2831_v32 }
 0x1f7   :  { %485 = vmatprep.subr.mxu0 %v2953_v17  ;;  %413 = vmatpush1.msra.mxu1 %v2837_v33 }
 0x1f8   :  { %486 = vmatpush1.msra.mxu0 %v2960_v18  ;;  %414 = vmatprep.subr.mxu1 %v2843_v34 }
 0x1f9   :  { %487 = vmatprep.subr.mxu0 %v2967_v19  ;;  %415 = vmatpush1.msra.mxu1 %v2849_v35 }
 0x1fa   :  { %488 = vmatpush1.msra.mxu0 %v2974_v20  ;;  %416 = vmatprep.subr.mxu1 %v2855_v36 }
 0x1fb   :  { %489 = vmatprep.subr.mxu0 %v2981_v21  ;;  %417 = vmatpush1.msra.mxu1 %v2861_v38 }
 0x1fc   :  { %490 = vmatpush1.msra.mxu0 %v2988_v22  ;;  %418 = vmatprep.subr.mxu1 %v2873_v40 }
 0x1fd   :  { %491 = vmatprep.subr.mxu0 %v2995_v24  ;;  %419 = vmatpush1.msra.mxu1 %v2879_v41 }
 0x1fe   :  { %492 = vmatpush1.msra.mxu0 %v3002_v25  ;;  %420 = vmatprep.subr.mxu1 %v2886_v42 }
 0x1ff   :  { %493 = vmatprep.subr.mxu0 %v3009_v26  ;;  %421 = vmatpush1.msra.mxu1 %v2892_v43 }
 0x200   :  { %494 = vmatpush1.msra.mxu0 %v3016_v27  ;;  %422 = vmatprep.subr.mxu1 %v2898_v44 }
 0x201   :  { %495 = vmatprep.subr.mxu0 %v3023_v28  ;;  %423 = vmatpush1.msra.mxu1 %v2904_v45 }
 0x202   :  { %496 = vmatpush1.msra.mxu0 %v3030_v29  ;;  %424 = vmatprep.subr.mxu1 %v2910_v46 }
 0x203   :  { %530 = vmatmul.mubr.f32.vlgmr.msra.gmra.mxu0 %v3844_v3  ;;  %425 = vmatpush1.msra.mxu1 %v2916_v47 }
 0x204   :  { %458 = vmatprep.mubr.f32.mxu1 %v3844_v3  ;;  %577 = vmatprep.subr.mxu1 %v2696_v0 }
 0x205   :  { %684 = vmatprep.subr.mxu0 %v2821_v30  ;;  %732 = vmatprep.mubr.f32.mxu0 %v3844_v3 }
 0x206   :  { %685 = vmatpush1.msra.mxu0 %v2826_v31 }
 0x207   :  { %686 = vmatprep.subr.mxu0 %v2831_v32 }
 0x208   :  { %687 = vmatpush1.msra.mxu0 %v2837_v33 }
 0x209   :  { %688 = vmatprep.subr.mxu0 %v2843_v34 }
 0x20a   :  { %689 = vmatpush1.msra.mxu0 %v2849_v35 }
 0x20b   :  { %690 = vmatprep.subr.mxu0 %v2855_v36 }
 0x20c   :  { %691 = vmatpush1.msra.mxu0 %v2861_v38 }
 0x20d   :  { %692 = vmatprep.subr.mxu0 %v2873_v40 }
 0x20e   :  { %693 = vmatpush1.msra.mxu0 %v2879_v41 }
 0x20f   :  { %694 = vmatprep.subr.mxu0 %v2886_v42  ;;  %v102_v42 = vsub.s32 1, %v2922_v51 }
 0x210   :  { %695 = vmatpush1.msra.mxu0 %v2892_v43 }
 0x211   :  { %696 = vmatprep.subr.mxu0 %v2898_v44 }
 0x212   :  { %697 = vmatpush1.msra.mxu0 %v2904_v45 }
 0x213   :  { %698 = vmatprep.subr.mxu0 %v2910_v46 }
 0x214   :  { %699 = vmatpush1.msra.mxu0 %v2916_v47 }
 0x215   :  { %852 = vmatprep.subr.mxu0 %v2696_v0 }
 0x2b3   :  { %v353_v48 = vpop.f32.mrf.mxu0  ;;  %v282_v55 = vpop.f32.mrf.mxu1 }
 0x2b4   :  { %v360_v49 = vadd.f32 %v2417_v37, %v353_v48  ;;  %v283_v59 = vadd.f32 %v282_v55, %v3068_v54  ;;  %v370_v48 = vrot.slane %v2417_v37, 2  ;;  %v3076_v55 = vld [vmem:[%s3840_s6] ss:$0 sm:$0xff] }
 0x2b5   :  { %v355_v56 = vpop.f32.mrf.mxu0 }
 0x2b6   :  { %v2418_v50 = vmul.f32 -1.442695, %v360_v49  ;;  %v367_v49 = vadd.f32 %v2815_v23, %v355_v56 }
 0x2b8   :  { %2500 = vpow2.f32 %v2418_v50 }
 0x2c3   :  { %v531_v61 = vpop.f32.mrf.mxu0 }
 0x2c4   :  { %v536_v3 = vadd.f32 %v531_v61, %v283_v59 }
 0x2c5   :  { %v2501_v0 = vpop.eup %2500 }
 0x2c6   :  { %v364_v47 = vadd.f32 1.0, %v2501_v0  ;;  %v2420_v46 = vmul.f32 -1.442695, %v536_v3  ;;  %v533_v0 = vpop.f32.mrf.mxu0  ;;  %v3078_v3 = vrot.slane %v94_v53, %v102_v42 }
 0x2c8   :  { %2502 = vrcp.f32 %v364_v47  ;;  %v284_v47 = vpop.f32.mrf.mxu1 }
 0x2c9   :  { %2504 = vpow2.f32 %v2420_v46  ;;  %v543_v46 = vadd.f32 %v3076_v55, %v533_v0 }
 0x2d5   :  { %v2503_v50 = vpop.eup %2502 }
 0x2d6   :  { %v2505_v45 = vpop.eup %2504  ;;  %v368_v44 = vmul.f32 %v2503_v50, %v367_v49  ;;  %v374_v59 = vsub.f32 1.0, %v2503_v50  ;;  %v380_v42 = vmul.f32 %v2503_v50, %v2927_v58  ;;  %v3879_v58 = vmov 0.0  }
 0x2d7   :  { %v540_v43 = vadd.f32 1.0, %v2505_v45  ;;  %v285_v45 = vadd.f32 %v284_v47, %v3078_v3 }
 0x2d8   :  { %v372_v52 = vadd.f32 %v370_v48, %v368_v44 }
 0x2d9   :  { %2506 = vrcp.f32 %v540_v43 }
 0x2da   :  { %2508 = vtanh.f32 %v372_v52 }
 0x2e6   :  { %v2507_v37 = vpop.eup %2506 }
 0x2e7   :  { %v2509_v56 = vpop.eup %2508  ;;  %v544_v44 = vmul.f32 %v2507_v37, %v543_v46  ;;  %v547_v52 = vsub.f32 1.0, %v2507_v37  ;;  %v553_v46 = vmul.f32 0.0, %v2507_v37  ;;  %v3880_v37 = vld [vmem:[#allocation8_spill] sm:$0xff] }
 0x2e8   :  { %376 = vrot.lane.b32.xlu1 %v2509_v56, %s2641_s21 }
 0x2e9   :  { %v545_v43 = vadd.f32 %v544_v44, %v285_v45  ;;  %v3881_v44 = vld [vmem:[#allocation9_spill] sm:$0xff] }
 0x2eb   :  { %2510 = vtanh.f32 %v545_v43  ;;  %v3882_v43 = vld [vmem:[#allocation10_spill] sm:$0xff] }
 0x2f8   :  { %v2511_v51 = vpop.eup %2510 }
 0x2f9   :  { %549 = vrot.lane.b32.xlu0 %v2511_v51, %s2641_s21  ;;  %v3883_v51 = vld [vmem:[#allocation11_spill] sm:$0xff] }
 0x35a   :  { %v377_v61 = vpop.permute.xlu1 %376 }
 0x35b   :  { %v379_v53 = vmul.f32 %v377_v61, %v374_v59  ;;  %v3884_v59 = vld [vmem:[#allocation12_spill] sm:$0xff]  ;;  %v3885_v61 = vld [vmem:[#allocation13_spill] sm:$0xff] }
 0x35d   :  { %v3085_v48 = vadd.f32 %v380_v42, %v379_v53  ;;  %v3886_v42 = vld [vmem:[#allocation3_spill] sm:$0xff] }
 0x35f   :  { %v389_v49 = vrot.slane %v3085_v48, %v2925_v57 }
 0x361   :  { %390 = vrot.lane.b32.xlu1 %v389_v49, %s2641_s21 }
 0x36b   :  { %v550_v0 = vpop.permute.xlu0 %549 }
 0x36c   :  { %v552_v47 = vmul.f32 %v550_v0, %v547_v52  ;;  %v2422_v52 = vld [vmem:[%s3835_s0 + $0x8] sm:$0xf] }
 0x36e   :  { %v3090_v56 = vadd.f32 %v553_v46, %v552_v47 }
 0x370   :  { %556 = vrot.lane.b32.xlu1 %v3090_v56, %s2641_s21 }
 0x3d3   :  { %v391_v45 = vpop.permute.xlu1 %390 }
 0x3d4   :  { %2419 = vmatmul.mubr.msk.f32.vlgmr.msra.gmra.mxu1 %vm106_vm0, %v391_v45 }
 0x3d5   :  { %578 = vmatpush1.msra.mxu1 %v2701_v1  ;;  %625 = vmatprep.mubr.f32.mxu1 %v3879_v58 }
 0x3d6   :  { %579 = vmatprep.subr.mxu1 %v2706_v2 }
 0x3d7   :  { %580 = vmatpush1.msra.mxu1 %v2714_v4 }
 0x3d8   :  { %581 = vmatprep.subr.mxu1 %v2720_v5 }
 0x3d9   :  { %582 = vmatpush1.msra.mxu1 %v2726_v6 }
 0x3da   :  { %583 = vmatprep.subr.mxu1 %v2732_v7 }
 0x3db   :  { %584 = vmatpush1.msra.mxu1 %v2738_v8 }
 0x3dc   :  { %585 = vmatprep.subr.mxu1 %v2744_v9 }
 0x3dd   :  { %586 = vmatpush1.msra.mxu1 %v2750_v10 }
 0x3de   :  { %587 = vmatprep.subr.mxu1 %v2756_v11 }
 0x3df   :  { %588 = vmatpush1.msra.mxu1 %v2762_v12 }
 0x3e0   :  { %589 = vmatprep.subr.mxu1 %v2768_v13 }
 0x3e1   :  { %590 = vmatpush1.msra.mxu1 %v2774_v14 }
 0x3e2   :  { %v557_v50 = vpop.permute.xlu1 %556  ;;  %591 = vmatprep.subr.mxu1 %v2780_v15 }
 0x3e3   :  { %560 = vst.msk [vmem:[#allocation2] sm:$0x3] %vm559_vm1, %v557_v50  ;;  %592 = vmatpush1.msra.mxu1 %v2786_v16 }
 0x3e4   :  { %2421 = vmatmul.mubr.msk.f32.vlgmr.msra.gmra.mxu1 %vm106_vm0, %v391_v45  ;;  %757 = vmatprep.subr.mxu1 %v2866_v39 }
 0x3e5   :  { %758 = vmatpush1.msra.mxu1 %v2935_v60  ;;  %805 = vmatprep.mubr.f32.mxu1 %v3879_v58 }
 0x3e6   :  { %759 = vmatprep.subr.mxu1 %v2940_v62 }
 0x3e7   :  { %760 = vmatpush1.msra.mxu1 %v2947_v63 }
 0x3e8   :  { %761 = vmatprep.subr.mxu1 %v2953_v17 }
 0x3e9   :  { %762 = vmatpush1.msra.mxu1 %v2960_v18 }
 0x3ea   :  { %763 = vmatprep.subr.mxu1 %v2967_v19 }
 0x3eb   :  { %764 = vmatpush1.msra.mxu1 %v2974_v20 }
 0x3ec   :  { %765 = vmatprep.subr.mxu1 %v2981_v21 }
 0x3ed   :  { %766 = vmatpush1.msra.mxu1 %v2988_v22 }
 0x3ee   :  { %767 = vmatprep.subr.mxu1 %v2995_v24 }
 0x3ef   :  { %768 = vmatpush1.msra.mxu1 %v3002_v25 }
 0x3f0   :  { %769 = vmatprep.subr.mxu1 %v3009_v26 }
 0x3f1   :  { %770 = vmatpush1.msra.mxu1 %v3016_v27 }
 0x3f2   :  { %771 = vmatprep.subr.mxu1 %v3023_v28 }
 0x3f3   :  { %772 = vmatpush1.msra.mxu1 %v3030_v29 }
 0x3f4   :  { %2425 = vmatmul.mubr.msk.f32.vlgmr.msra.gmra.mxu1 %vm106_vm0, %v557_v50  ;;  %959 = vmatprep.subr.mxu1 %v2821_v30 }
 0x3f5   :  { %960 = vmatpush1.msra.mxu1 %v2826_v31  ;;  %1007 = vmatprep.mubr.f32.mxu1 %v3879_v58 }
 0x3f6   :  { %961 = vmatprep.subr.mxu1 %v2831_v32 }
 0x3f7   :  { %962 = vmatpush1.msra.mxu1 %v2837_v33 }
 0x3f8   :  { %963 = vmatprep.subr.mxu1 %v2843_v34 }
 0x3f9   :  { %964 = vmatpush1.msra.mxu1 %v2849_v35 }
 0x3fa   :  { %965 = vmatprep.subr.mxu1 %v2855_v36 }
 0x3fb   :  { %966 = vmatpush1.msra.mxu1 %v2861_v38 }
 0x3fc   :  { %967 = vmatprep.subr.mxu1 %v2873_v40 }
 0x3fd   :  { %968 = vmatpush1.msra.mxu1 %v2879_v41 }
 0x3fe   :  { %969 = vmatprep.subr.mxu1 %v3880_v37 }
 0x3ff   :  { %970 = vmatpush1.msra.mxu1 %v3881_v44 }
 0x400   :  { %971 = vmatprep.subr.mxu1 %v3882_v43 }
 0x401   :  { %972 = vmatpush1.msra.mxu1 %v3883_v51 }
 0x402   :  { %973 = vmatprep.subr.mxu1 %v3884_v59 }
 0x403   :  { %974 = vmatpush1.msra.mxu1 %v3885_v61 }
 0x404   :  { %1127 = vmatprep.subr.mxu1 %v3886_v42  ;;  %v644_v42 = vrot.slane %v2422_v52, 2 }
 0x494   :  { %v460_v53 = vpop.f32.mrf.mxu1 }
 0x495   :  { %v461_v50 = vadd.f32 %v460_v53, %v3068_v54 }
 0x496   :  { %v462_v49 = vpop.f32.mrf.mxu1 }
 0x4a4   :  { %v627_v0 = vpop.f32.mrf.mxu1 }
 0x4a5   :  { %v634_v46 = vadd.f32 %v2422_v52, %v627_v0 }
 0x4a6   :  { %v629_v45 = vpop.f32.mrf.mxu1 }
 0x4a7   :  { %v2423_v47 = vmul.f32 -1.442695, %v634_v46  ;;  %v641_v37 = vadd.f32 %v2815_v23, %v629_v45 }
 0x4a9   :  { %2512 = vpow2.f32 %v2423_v47 }
 0x4b4   :  { %v807_v51 = vpop.f32.mrf.mxu1 }
 0x4b5   :  { %v812_v43 = vadd.f32 %v807_v51, %v461_v50 }
 0x4b6   :  { %v2513_v59 = vpop.eup %2512  ;;  %v809_v46 = vpop.f32.mrf.mxu1 }
 0x4b7   :  { %v638_v44 = vadd.f32 1.0, %v2513_v59  ;;  %v2426_v61 = vmul.f32 -1.442695, %v812_v43  ;;  %v819_v53 = vadd.f32 %v3076_v55, %v809_v46  ;;  %v463_v59 = vadd.f32 %v462_v49, %v3078_v3 }
 0x4b9   :  { %2514 = vrcp.f32 %v638_v44 }
 0x4ba   :  { %2516 = vpow2.f32 %v2426_v61 }
 0x4c6   :  { %v2515_v41 = vpop.eup %2514 }
 0x4c7   :  { %v2517_v40 = vpop.eup %2516  ;;  %v642_v38 = vmul.f32 %v2515_v41, %v641_v37  ;;  %v648_v37 = vsub.f32 1.0, %v2515_v41 }
 0x4c8   :  { %v816_v36 = vadd.f32 1.0, %v2517_v40 }
 0x4c9   :  { %v646_v0 = vadd.f32 %v644_v42, %v642_v38 }
 0x4ca   :  { %2518 = vrcp.f32 %v816_v36  ;;  %v654_v36 = vmul.f32 %v2515_v41, %v3085_v48  ;;  %v3887_v48 = vld [vmem:[#allocation4_spill] sm:$0xff] }
 0x4cb   :  { %2520 = vtanh.f32 %v646_v0 }
 0x4d7   :  { %v2519_v47 = vpop.eup %2518 }
 0x4d8   :  { %v2521_v51 = vpop.eup %2520  ;;  %v820_v43 = vmul.f32 %v2519_v47, %v819_v53  ;;  %v823_v49 = vsub.f32 1.0, %v2519_v47  ;;  %v829_v50 = vmul.f32 %v2519_v47, %v3090_v56  ;;  %v3888_v56 = vld [vmem:[#allocation5_spill] sm:$0xff]  ;;  %v3889_v47 = vld [vmem:[#allocation6_spill] sm:$0xff] }
 0x4d9   :  { %650 = vrot.lane.b32.xlu0 %v2521_v51, %s2641_s21  ;;  %v3890_v51 = vld [vmem:[#allocation7_spill] sm:$0xff] }
 0x4da   :  { %v821_v44 = vadd.f32 %v820_v43, %v463_v59  ;;  %v3891_v59 = vld [vmem:[#allocation8_spill] sm:$0xff]  ;;  %v3892_v43 = vld [vmem:[#allocation9_spill] sm:$0xff] }
 0x4dc   :  { %2522 = vtanh.f32 %v821_v44  ;;  %v3893_v44 = vld [vmem:[#allocation10_spill] sm:$0xff] }
 0x4e9   :  { %v2523_v61 = vpop.eup %2522 }
 0x4ea   :  { %825 = vrot.lane.b32.xlu0 %v2523_v61, %s2641_s21  ;;  %v3894_v61 = vld [vmem:[#allocation11_spill] sm:$0xff] }
 0x54b   :  { %v651_v40 = vpop.permute.xlu0 %650 }
 0x54c   :  { %v653_v38 = vmul.f32 %v651_v40, %v648_v37  ;;  %v3895_v37 = vld [vmem:[#allocation12_spill] sm:$0xff]  ;;  %v3896_v40 = vld [vmem:[#allocation13_spill] sm:$0xff] }
 0x54e   :  { %v3159_v42 = vadd.f32 %v654_v36, %v653_v38  ;;  %v3897_v36 = vld [vmem:[#allocation3_spill] sm:$0xff] }
 0x550   :  { %v663_v52 = vrot.slane %v3159_v42, %v2925_v57 }
 0x552   :  { %664 = vrot.lane.b32.xlu1 %v663_v52, %s2641_s21 }
 0x55c   :  { %v826_v45 = vpop.permute.xlu0 %825 }
 0x55d   :  { %v828_v0 = vmul.f32 %v826_v45, %v823_v49  ;;  %v2428_v49 = vld [vmem:[%s3835_s0 + $0xc] sm:$0xf] }
 0x55f   :  { %v3165_v46 = vadd.f32 %v829_v50, %v828_v0 }
 0x561   :  { %832 = vrot.lane.b32.xlu1 %v3165_v46, %s2641_s21 }
 0x5c4   :  { %v665_v53 = vpop.permute.xlu1 %664 }
 0x5c5   :  { %2424 = vmatmul.mubr.msk.f32.vlgmr.msra.gmra.mxu0 %vm106_vm0, %v665_v53 }
 0x5c6   :  { %853 = vmatpush1.msra.mxu0 %v2701_v1  ;;  %900 = vmatprep.mubr.f32.mxu0 %v3879_v58 }
 0x5c7   :  { %854 = vmatprep.subr.mxu0 %v2706_v2 }
 0x5c8   :  { %855 = vmatpush1.msra.mxu0 %v2714_v4 }
 0x5c9   :  { %856 = vmatprep.subr.mxu0 %v2720_v5 }
 0x5ca   :  { %857 = vmatpush1.msra.mxu0 %v2726_v6 }
 0x5cb   :  { %858 = vmatprep.subr.mxu0 %v2732_v7 }
 0x5cc   :  { %859 = vmatpush1.msra.mxu0 %v2738_v8 }
 0x5cd   :  { %860 = vmatprep.subr.mxu0 %v2744_v9 }
 0x5ce   :  { %861 = vmatpush1.msra.mxu0 %v2750_v10 }
 0x5cf   :  { %862 = vmatprep.subr.mxu0 %v2756_v11 }
 0x5d0   :  { %863 = vmatpush1.msra.mxu0 %v2762_v12 }
 0x5d1   :  { %864 = vmatprep.subr.mxu0 %v2768_v13 }
 0x5d2   :  { %865 = vmatpush1.msra.mxu0 %v2774_v14 }
 0x5d3   :  { %866 = vmatprep.subr.mxu0 %v2780_v15  ;;  %v833_v41 = vpop.permute.xlu1 %832 }
 0x5d4   :  { %835 = vst.msk [vmem:[#allocation2 + $0x2] sm:$0x3] %vm559_vm1, %v833_v41  ;;  %867 = vmatpush1.msra.mxu0 %v2786_v16 }
 0x5d5   :  { %2427 = vmatmul.mubr.msk.f32.vlgmr.msra.gmra.mxu0 %vm106_vm0, %v665_v53  ;;  %1032 = vmatprep.subr.mxu0 %v2866_v39 }
 0x5d6   :  { %1033 = vmatpush1.msra.mxu0 %v2935_v60  ;;  %1080 = vmatprep.mubr.f32.mxu0 %v3879_v58 }
 0x5d7   :  { %1034 = vmatprep.subr.mxu0 %v2940_v62 }
 0x5d8   :  { %1035 = vmatpush1.msra.mxu0 %v2947_v63 }
 0x5d9   :  { %1036 = vmatprep.subr.mxu0 %v2953_v17 }
 0x5da   :  { %1037 = vmatpush1.msra.mxu0 %v2960_v18 }
 0x5db   :  { %1038 = vmatprep.subr.mxu0 %v2967_v19 }
 0x5dc   :  { %1039 = vmatpush1.msra.mxu0 %v2974_v20 }
 0x5dd   :  { %1040 = vmatprep.subr.mxu0 %v2981_v21 }
 0x5de   :  { %1041 = vmatpush1.msra.mxu0 %v2988_v22 }
 0x5df   :  { %1042 = vmatprep.subr.mxu0 %v2995_v24 }
 0x5e0   :  { %1043 = vmatpush1.msra.mxu0 %v3002_v25 }
 0x5e1   :  { %1044 = vmatprep.subr.mxu0 %v3009_v26 }
 0x5e2   :  { %1045 = vmatpush1.msra.mxu0 %v3016_v27 }
 0x5e3   :  { %1046 = vmatprep.subr.mxu0 %v3023_v28 }
 0x5e4   :  { %1047 = vmatpush1.msra.mxu0 %v3030_v29 }
 0x5e5   :  { %2431 = vmatmul.mubr.msk.f32.vlgmr.msra.gmra.mxu0 %vm106_vm0, %v833_v41  ;;  %1234 = vmatprep.subr.mxu0 %v2821_v30 }
 0x5e6   :  { %1235 = vmatpush1.msra.mxu0 %v2826_v31  ;;  %1282 = vmatprep.mubr.f32.mxu0 %v3879_v58 }
 0x5e7   :  { %1236 = vmatprep.subr.mxu0 %v2831_v32 }
 0x5e8   :  { %1237 = vmatpush1.msra.mxu0 %v2837_v33 }
 0x5e9   :  { %1238 = vmatprep.subr.mxu0 %v2843_v34 }
 0x5ea   :  { %1239 = vmatpush1.msra.mxu0 %v2849_v35 }
 0x5eb   :  { %1240 = vmatprep.subr.mxu0 %v3887_v48 }
 0x5ec   :  { %1241 = vmatpush1.msra.mxu0 %v3888_v56 }
 0x5ed   :  { %1242 = vmatprep.subr.mxu0 %v3889_v47 }
 0x5ee   :  { %1243 = vmatpush1.msra.mxu0 %v3890_v51 }
 0x5ef   :  { %1244 = vmatprep.subr.mxu0 %v3891_v59 }
 0x5f0   :  { %1245 = vmatpush1.msra.mxu0 %v3892_v43 }
 0x5f1   :  { %1246 = vmatprep.subr.mxu0 %v3893_v44 }
 0x5f2   :  { %1247 = vmatpush1.msra.mxu0 %v3894_v61 }
 0x5f3   :  { %1248 = vmatprep.subr.mxu0 %v3895_v37 }
 0x5f4   :  { %1249 = vmatpush1.msra.mxu0 %v3896_v40 }
 0x5f5   :  { %1402 = vmatprep.subr.mxu0 %v3897_v36  ;;  %v919_v36 = vrot.slane %v2428_v49, 2 }
 0x685   :  { %v734_v38 = vpop.f32.mrf.mxu0 }
 0x686   :  { %v735_v41 = vadd.f32 %v734_v38, %v3068_v54 }
 0x687   :  { %v736_v52 = vpop.f32.mrf.mxu0 }
 0x695   :  { %v902_v45 = vpop.f32.mrf.mxu0 }
 0x696   :  { %v909_v50 = vadd.f32 %v2428_v49, %v902_v45 }
 0x697   :  { %v904_v53 = vpop.f32.mrf.mxu0 }
 0x698   :  { %v2429_v0 = vmul.f32 -1.442695, %v909_v50  ;;  %v916_v59 = vadd.f32 %v2815_v23, %v904_v53 }
 0x69a   :  { %2524 = vpow2.f32 %v2429_v0 }
 0x6a5   :  { %v1082_v61 = vpop.f32.mrf.mxu0 }
 0x6a6   :  { %v1087_v44 = vadd.f32 %v1082_v61, %v735_v41 }
 0x6a7   :  { %v2525_v37 = vpop.eup %2524  ;;  %v1084_v50 = vpop.f32.mrf.mxu0 }
 0x6a8   :  { %v913_v43 = vadd.f32 1.0, %v2525_v37  ;;  %v2432_v40 = vmul.f32 -1.442695, %v1087_v44  ;;  %v1094_v38 = vadd.f32 %v3076_v55, %v1084_v50  ;;  %v737_v37 = vadd.f32 %v736_v52, %v3078_v3 }
 0x6aa   :  { %2526 = vrcp.f32 %v913_v43 }
 0x6ab   :  { %2528 = vpow2.f32 %v2432_v40 }
 0x6b7   :  { %v2527_v51 = vpop.eup %2526 }
 0x6b8   :  { %v2529_v47 = vpop.eup %2528  ;;  %v917_v56 = vmul.f32 %v2527_v51, %v916_v59  ;;  %v923_v59 = vsub.f32 1.0, %v2527_v51 }
 0x6b9   :  { %v1091_v48 = vadd.f32 1.0, %v2529_v47 }
 0x6ba   :  { %v921_v45 = vadd.f32 %v919_v36, %v917_v56 }
 0x6bb   :  { %2530 = vrcp.f32 %v1091_v48  ;;  %v929_v48 = vmul.f32 %v2527_v51, %v3159_v42 }
 0x6bc   :  { %2532 = vtanh.f32 %v921_v45 }
 0x6c8   :  { %v2531_v0 = vpop.eup %2530 }
 0x6c9   :  { %v2533_v61 = vpop.eup %2532  ;;  %v1095_v44 = vmul.f32 %v2531_v0, %v1094_v38  ;;  %v1098_v52 = vsub.f32 1.0, %v2531_v0  ;;  %v1104_v36 = vmul.f32 %v2531_v0, %v3165_v46 }
 0x6ca   :  { %925 = vrot.lane.b32.xlu0 %v2533_v61, %s2641_s21 }
 0x6cb   :  { %v1096_v43 = vadd.f32 %v1095_v44, %v737_v37 }
 0x6cd   :  { %2534 = vtanh.f32 %v1096_v43 }
 0x6da   :  { %v2535_v40 = vpop.eup %2534 }
 0x6db   :  { %1100 = vrot.lane.b32.xlu0 %v2535_v40, %s2641_s21 }
 0x73c   :  { %v926_v47 = vpop.permute.xlu0 %925 }
 0x73d   :  { %v928_v56 = vmul.f32 %v926_v47, %v923_v59 }
 0x73f   :  { %v3234_v49 = vadd.f32 %v929_v48, %v928_v56 }
 0x741   :  { %v938_v53 = vrot.slane %v3234_v49, %v2925_v57 }
 0x743   :  { %939 = vrot.lane.b32.xlu1 %v938_v53, %s2641_s21 }
 0x74d   :  { %v1101_v41 = vpop.permute.xlu0 %1100 }
 0x74e   :  { %v1103_v45 = vmul.f32 %v1101_v41, %v1098_v52 }
 0x750   :  { %v3240_v50 = vadd.f32 %v1104_v36, %v1103_v45 }
 0x752   :  { %1107 = vrot.lane.b32.xlu1 %v3240_v50, %s2641_s21 }
 0x7b5   :  { %v940_v38 = vpop.permute.xlu1 %939 }
 0x7b6   :  { %2430 = vmatmul.mubr.msk.f32.vlgmr.msra.gmra.mxu1 %vm106_vm0, %v940_v38 }
 0x7b7   :  { %1128 = vmatpush1.msra.mxu1 %v2701_v1  ;;  %1175 = vmatprep.mubr.f32.mxu1 %v3879_v58 }
 0x7b8   :  { %1129 = vmatprep.subr.mxu1 %v2706_v2  ;;  %v3898_v2 = vld [vmem:[#allocation4_spill] sm:$0xff] }
 0x7b9   :  { %1130 = vmatpush1.msra.mxu1 %v2714_v4  ;;  %v3899_v4 = vld [vmem:[#allocation5_spill] sm:$0xff] }
 0x7ba   :  { %1131 = vmatprep.subr.mxu1 %v2720_v5  ;;  %v3900_v5 = vld [vmem:[#allocation6_spill] sm:$0xff] }
 0x7bb   :  { %1132 = vmatpush1.msra.mxu1 %v2726_v6  ;;  %v3901_v6 = vld [vmem:[#allocation7_spill] sm:$0xff] }
 0x7bc   :  { %1133 = vmatprep.subr.mxu1 %v2732_v7  ;;  %v3902_v7 = vld [vmem:[#allocation8_spill] sm:$0xff] }
 0x7bd   :  { %1134 = vmatpush1.msra.mxu1 %v2738_v8  ;;  %v3903_v8 = vld [vmem:[#allocation9_spill] sm:$0xff] }
 0x7be   :  { %1135 = vmatprep.subr.mxu1 %v2744_v9  ;;  %v3904_v9 = vld [vmem:[#allocation10_spill] sm:$0xff] }
 0x7bf   :  { %1136 = vmatpush1.msra.mxu1 %v2750_v10  ;;  %v3905_v10 = vld [vmem:[#allocation11_spill] sm:$0xff] }
 0x7c0   :  { %1137 = vmatprep.subr.mxu1 %v2756_v11  ;;  %v3906_v11 = vld [vmem:[#allocation12_spill] sm:$0xff] }
 0x7c1   :  { %1138 = vmatpush1.msra.mxu1 %v2762_v12  ;;  %v3907_v12 = vld [vmem:[#allocation13_spill] sm:$0xff] }
 0x7c2   :  { %1139 = vmatprep.subr.mxu1 %v2768_v13  ;;  %v3301_v13 = vld [vmem:[%s3834_s1 + $0x78] sm:$0xff] }
 0x7c3   :  { %1140 = vmatpush1.msra.mxu1 %v2774_v14 }
 0x7c4   :  { %1141 = vmatprep.subr.mxu1 %v2780_v15  ;;  %v1108_v1 = vpop.permute.xlu1 %1107 }
 0x7c5   :  { %1110 = vst.msk [vmem:[#allocation2 + $0x4] sm:$0x3] %vm559_vm1, %v1108_v1  ;;  %1142 = vmatpush1.msra.mxu1 %v2786_v16  ;;  %v2434_v16 = vld [vmem:[%s3835_s0 + $0x10] sm:$0xf] }
 0x7c6   :  { %2433 = vmatmul.mubr.msk.f32.vlgmr.msra.gmra.mxu1 %vm106_vm0, %v940_v38  ;;  %1307 = vmatprep.subr.mxu1 %v2866_v39  ;;  %v1194_v61 = vrot.slane %v2434_v16, 2 }
 0x7c7   :  { %1308 = vmatpush1.msra.mxu1 %v2935_v60  ;;  %1355 = vmatprep.mubr.f32.mxu1 %v3879_v58 }
 0x7c8   :  { %1309 = vmatprep.subr.mxu1 %v2940_v62 }
 0x7c9   :  { %1310 = vmatpush1.msra.mxu1 %v2947_v63 }
 0x7ca   :  { %1311 = vmatprep.subr.mxu1 %v2953_v17 }
 0x7cb   :  { %1312 = vmatpush1.msra.mxu1 %v2960_v18 }
 0x7cc   :  { %1313 = vmatprep.subr.mxu1 %v2967_v19 }
 0x7cd   :  { %1314 = vmatpush1.msra.mxu1 %v2974_v20 }
 0x7ce   :  { %1315 = vmatprep.subr.mxu1 %v2981_v21 }
 0x7cf   :  { %1316 = vmatpush1.msra.mxu1 %v2988_v22 }
 0x7d0   :  { %1317 = vmatprep.subr.mxu1 %v2995_v24 }
 0x7d1   :  { %1318 = vmatpush1.msra.mxu1 %v3002_v25 }
 0x7d2   :  { %1319 = vmatprep.subr.mxu1 %v3009_v26 }
 0x7d3   :  { %1320 = vmatpush1.msra.mxu1 %v3016_v27 }
 0x7d4   :  { %1321 = vmatprep.subr.mxu1 %v3023_v28 }
 0x7d5   :  { %1322 = vmatpush1.msra.mxu1 %v3030_v29 }
 0x7d6   :  { %2437 = vmatmul.mubr.msk.f32.vlgmr.msra.gmra.mxu1 %vm106_vm0, %v1108_v1  ;;  %1509 = vmatprep.subr.mxu1 %v2821_v30 }
 0x7d7   :  { %1510 = vmatpush1.msra.mxu1 %v2826_v31  ;;  %1557 = vmatprep.mubr.f32.mxu1 %v3879_v58 }
 0x7d8   :  { %1511 = vmatprep.subr.mxu1 %v2831_v32 }
 0x7d9   :  { %1512 = vmatpush1.msra.mxu1 %v2837_v33 }
 0x7da   :  { %1513 = vmatprep.subr.mxu1 %v2843_v34 }
 0x7db   :  { %1514 = vmatpush1.msra.mxu1 %v2849_v35 }
 0x7dc   :  { %1515 = vmatprep.subr.mxu1 %v3898_v2 }
 0x7dd   :  { %1516 = vmatpush1.msra.mxu1 %v3899_v4 }
 0x7de   :  { %1517 = vmatprep.subr.mxu1 %v3900_v5 }
 0x7df   :  { %1518 = vmatpush1.msra.mxu1 %v3901_v6 }
 0x7e0   :  { %1519 = vmatprep.subr.mxu1 %v3902_v7 }
 0x7e1   :  { %1520 = vmatpush1.msra.mxu1 %v3903_v8 }
 0x7e2   :  { %1521 = vmatprep.subr.mxu1 %v3904_v9 }
 0x7e3   :  { %1522 = vmatpush1.msra.mxu1 %v3905_v10 }
 0x7e4   :  { %1523 = vmatprep.subr.mxu1 %v3906_v11 }
 0x7e5   :  { %1524 = vmatpush1.msra.mxu1 %v3907_v12 }
 0x7e6   :  { %1677 = vmatprep.subr.mxu1 %v3301_v13 }
 0x876   :  { %v1009_v14 = vpop.f32.mrf.mxu1 }
 0x877   :  { %v1010_v34 = vadd.f32 %v1009_v14, %v3068_v54  ;;  %v3341_v14 = vld [vmem:[%s3834_s1 + $0x60] sm:$0xff] }
 0x878   :  { %v1011_v15 = vpop.f32.mrf.mxu1 }
 0x879   :  { %v1012_v41 = vadd.f32 %v1011_v15, %v3078_v3  ;;  %v3347_v15 = vld [vmem:[%s3834_s1 + $0x58] sm:$0xff] }
 0x886   :  { %v1177_v30 = vpop.f32.mrf.mxu1 }
 0x887   :  { %v1184_v31 = vadd.f32 %v2434_v16, %v1177_v30  ;;  %v3353_v16 = vld [vmem:[%s3834_s1 + $0x50] sm:$0xff]  ;;  %v3359_v30 = vld [vmem:[%s3834_s1 + $0x48] sm:$0xff] }
 0x888   :  { %v1179_v33 = vpop.f32.mrf.mxu1 }
 0x889   :  { %v2435_v32 = vmul.f32 -1.442695, %v1184_v31  ;;  %v1191_v37 = vadd.f32 %v2815_v23, %v1179_v33  ;;  %v3365_v31 = vld [vmem:[%s3834_s1 + $0x40] sm:$0xff]  ;;  %v3377_v33 = vld [vmem:[%s3834_s1 + $0x30] sm:$0xff] }
 0x88b   :  { %2536 = vpow2.f32 %v2435_v32  ;;  %v3371_v32 = vld [vmem:[%s3834_s1 + $0x38] sm:$0xff] }
 0x896   :  { %v1357_v35 = vpop.f32.mrf.mxu1 }
 0x897   :  { %v1362_v42 = vadd.f32 %v1357_v35, %v1010_v34  ;;  %v3383_v34 = vld [vmem:[%s3834_s1 + $0x28] sm:$0xff]  ;;  %v3389_v35 = vld [vmem:[%s3834_s1 + $0x20] sm:$0xff] }
 0x898   :  { %v2537_v46 = vpop.eup %2536  ;;  %v1359_v48 = vpop.f32.mrf.mxu1 }
 0x899   :  { %v1188_v51 = vadd.f32 1.0, %v2537_v46  ;;  %v2438_v0 = vmul.f32 -1.442695, %v1362_v42  ;;  %v1369_v56 = vadd.f32 %v3076_v55, %v1359_v48  ;;  %v3395_v42 = vld [vmem:[%s3834_s1 + $0x18] sm:$0xff]  ;;  %v3401_v46 = vld [vmem:[%s3834_s1 + $0x10] sm:$0xff] }
 0x89b   :  { %2538 = vrcp.f32 %v1188_v51  ;;  %v3407_v51 = vld [vmem:[%s3834_s1 + $0x8] sm:$0xff] }
 0x89c   :  { %2540 = vpow2.f32 %v2438_v0 }
 0x8a8   :  { %v2539_v44 = vpop.eup %2538 }
 0x8a9   :  { %v2541_v43 = vpop.eup %2540  ;;  %v1192_v40 = vmul.f32 %v2539_v44, %v1191_v37  ;;  %v1198_v38 = vsub.f32 1.0, %v2539_v44  ;;  %v1204_v2 = vmul.f32 %v2539_v44, %v3234_v49  ;;  %v3328_v49 = vld [vmem:[%s3834_s1 + $0x70] sm:$0xff] }
 0x8aa   :  { %v1366_v59 = vadd.f32 1.0, %v2541_v43  ;;  %v2440_v43 = vld [vmem:[%s3835_s0 + $0x14] sm:$0xf] }
 0x8ab   :  { %v1196_v47 = vadd.f32 %v1194_v61, %v1192_v40  ;;  %v3414_v61 = vld [vmem:[%s3834_s1] sm:$0xff] }
 0x8ac   :  { %2542 = vrcp.f32 %v1366_v59 }
 0x8ad   :  { %2544 = vtanh.f32 %v1196_v47 }
 0x8b9   :  { %v2543_v53 = vpop.eup %2542 }
 0x8ba   :  { %v2545_v52 = vpop.eup %2544  ;;  %v1370_v36 = vmul.f32 %v2543_v53, %v1369_v56  ;;  %v1373_v7 = vsub.f32 1.0, %v2543_v53  ;;  %v1379_v9 = vmul.f32 %v2543_v53, %v3240_v50  ;;  %v3335_v50 = vld [vmem:[%s3834_s1 + $0x68] sm:$0xff] }
 0x8bb   :  { %1200 = vrot.lane.b32.xlu0 %v2545_v52, %s2641_s21 }
 0x8bc   :  { %v1371_v45 = vadd.f32 %v1370_v36, %v1012_v41 }
 0x8be   :  { %2546 = vtanh.f32 %v1371_v45 }
 0x8cb   :  { %v2547_v23 = vpop.eup %2546 }
 0x8cc   :  { %1375 = vrot.lane.b32.xlu0 %v2547_v23, %s2641_s21  ;;  %v3541_v23 = vld [vmem:[%s3836_s2] ss:$0 sm:$0xff] }
 0x92d   :  { %v1201_v1 = vpop.permute.xlu0 %1200 }
 0x92e   :  { %v1203_v4 = vmul.f32 %v1201_v1, %v1198_v38 }
 0x930   :  { %v3314_v5 = vadd.f32 %v1204_v2, %v1203_v4 }
 0x932   :  { %v1213_v6 = vrot.slane %v3314_v5, %v2925_v57 }
 0x934   :  { %1214 = vrot.lane.b32.xlu1 %v1213_v6, %s2641_s21 }
 0x93e   :  { %v1376_v8 = vpop.permute.xlu0 %1375 }
 0x93f   :  { %v1378_v10 = vmul.f32 %v1376_v8, %v1373_v7 }
 0x941   :  { %v3320_v11 = vadd.f32 %v1379_v9, %v1378_v10 }
 0x943   :  { %1382 = vrot.lane.b32.xlu1 %v3320_v11, %s2641_s21 }
 0x9a6   :  { %v1215_v12 = vpop.permute.xlu1 %1214 }
 0x9a7   :  { %2436 = vmatmul.mubr.msk.f32.vlgmr.msra.gmra.mxu0 %vm106_vm0, %v1215_v12 }
 0x9a8   :  { %1403 = vmatpush1.msra.mxu0 %v3328_v49  ;;  %1450 = vmatprep.mubr.f32.mxu0 %v3879_v58 }
 0x9a9   :  { %1404 = vmatprep.subr.mxu0 %v3335_v50 }
 0x9aa   :  { %1405 = vmatpush1.msra.mxu0 %v3341_v14 }
 0x9ab   :  { %1406 = vmatprep.subr.mxu0 %v3347_v15 }
 0x9ac   :  { %1407 = vmatpush1.msra.mxu0 %v3353_v16 }
 0x9ad   :  { %1408 = vmatprep.subr.mxu0 %v3359_v30 }
 0x9ae   :  { %1409 = vmatpush1.msra.mxu0 %v3365_v31 }
 0x9af   :  { %1410 = vmatprep.subr.mxu0 %v3371_v32 }
 0x9b0   :  { %1411 = vmatpush1.msra.mxu0 %v3377_v33 }
 0x9b1   :  { %1412 = vmatprep.subr.mxu0 %v3383_v34 }
 0x9b2   :  { %1413 = vmatpush1.msra.mxu0 %v3389_v35 }
 0x9b3   :  { %1414 = vmatprep.subr.mxu0 %v3395_v42 }
 0x9b4   :  { %1415 = vmatpush1.msra.mxu0 %v3401_v46 }
 0x9b5   :  { %1416 = vmatprep.subr.mxu0 %v3407_v51  ;;  %v1383_v0 = vpop.permute.xlu1 %1382 }
 0x9b6   :  { %1385 = vst.msk [vmem:[#allocation2 + $0x6] sm:$0x3] %vm559_vm1, %v1383_v0  ;;  %1417 = vmatpush1.msra.mxu0 %v3414_v61 }
 0x9b7   :  { %2439 = vmatmul.mubr.msk.f32.vlgmr.msra.gmra.mxu0 %vm106_vm0, %v1215_v12  ;;  %1582 = vmatprep.subr.mxu0 %v2866_v39  ;;  %v3439_v39 = vld [vmem:[%s3837_s3 + $0x78] sm:$0xff] }
 0x9b8   :  { %1583 = vmatpush1.msra.mxu0 %v2935_v60  ;;  %1630 = vmatprep.mubr.f32.mxu0 %v3879_v58  ;;  %v3445_v60 = vld [vmem:[%s3837_s3 + $0x70] sm:$0xff] }
 0x9b9   :  { %1584 = vmatprep.subr.mxu0 %v2940_v62  ;;  %v3452_v62 = vld [vmem:[%s3837_s3 + $0x68] sm:$0xff] }
 0x9ba   :  { %1585 = vmatpush1.msra.mxu0 %v2947_v63  ;;  %v3458_v63 = vld [vmem:[%s3837_s3 + $0x60] sm:$0xff] }
 0x9bb   :  { %1586 = vmatprep.subr.mxu0 %v2953_v17  ;;  %v3464_v17 = vld [vmem:[%s3837_s3 + $0x58] sm:$0xff] }
 0x9bc   :  { %1587 = vmatpush1.msra.mxu0 %v2960_v18  ;;  %v3470_v18 = vld [vmem:[%s3837_s3 + $0x50] sm:$0xff] }
 0x9bd   :  { %1588 = vmatprep.subr.mxu0 %v2967_v19  ;;  %v3476_v19 = vld [vmem:[%s3837_s3 + $0x48] sm:$0xff] }
 0x9be   :  { %1589 = vmatpush1.msra.mxu0 %v2974_v20  ;;  %v3482_v20 = vld [vmem:[%s3837_s3 + $0x40] sm:$0xff] }
 0x9bf   :  { %1590 = vmatprep.subr.mxu0 %v2981_v21  ;;  %v3488_v21 = vld [vmem:[%s3837_s3 + $0x38] sm:$0xff] }
 0x9c0   :  { %1591 = vmatpush1.msra.mxu0 %v2988_v22  ;;  %v3494_v22 = vld [vmem:[%s3837_s3 + $0x30] sm:$0xff] }
 0x9c1   :  { %1592 = vmatprep.subr.mxu0 %v2995_v24  ;;  %v3500_v24 = vld [vmem:[%s3837_s3 + $0x28] sm:$0xff] }
 0x9c2   :  { %1593 = vmatpush1.msra.mxu0 %v3002_v25  ;;  %v3506_v25 = vld [vmem:[%s3837_s3 + $0x20] sm:$0xff] }
 0x9c3   :  { %1594 = vmatprep.subr.mxu0 %v3009_v26  ;;  %v3512_v26 = vld [vmem:[%s3837_s3 + $0x18] sm:$0xff] }
 0x9c4   :  { %1595 = vmatpush1.msra.mxu0 %v3016_v27  ;;  %v3518_v27 = vld [vmem:[%s3837_s3 + $0x10] sm:$0xff] }
 0x9c5   :  { %1596 = vmatprep.subr.mxu0 %v3023_v28  ;;  %v3524_v28 = vld [vmem:[%s3837_s3 + $0x8] sm:$0xff] }
 0x9c6   :  { %1597 = vmatpush1.msra.mxu0 %v3030_v29  ;;  %v3530_v29 = vld [vmem:[%s3837_s3] sm:$0xff] }
 0x9c7   :  { %2443 = vmatmul.mubr.msk.f32.vlgmr.msra.gmra.mxu0 %vm106_vm0, %v1383_v0  ;;  %1784 = vmatprep.subr.mxu0 %v3439_v39 }
 0x9c8   :  { %1785 = vmatpush1.msra.mxu0 %v3445_v60  ;;  %1832 = vmatprep.mubr.f32.mxu0 %v3879_v58 }
 0x9c9   :  { %1786 = vmatprep.subr.mxu0 %v3452_v62 }
 0x9ca   :  { %1787 = vmatpush1.msra.mxu0 %v3458_v63 }
 0x9cb   :  { %1788 = vmatprep.subr.mxu0 %v3464_v17 }
 0x9cc   :  { %1789 = vmatpush1.msra.mxu0 %v3470_v18 }
 0x9cd   :  { %1790 = vmatprep.subr.mxu0 %v3476_v19 }
 0x9ce   :  { %1791 = vmatpush1.msra.mxu0 %v3482_v20 }
 0x9cf   :  { %1792 = vmatprep.subr.mxu0 %v3488_v21 }
 0x9d0   :  { %1793 = vmatpush1.msra.mxu0 %v3494_v22 }
 0x9d1   :  { %1794 = vmatprep.subr.mxu0 %v3500_v24 }
 0x9d2   :  { %1795 = vmatpush1.msra.mxu0 %v3506_v25 }
 0x9d3   :  { %1796 = vmatprep.subr.mxu0 %v3512_v26 }
 0x9d4   :  { %1797 = vmatpush1.msra.mxu0 %v3518_v27 }
 0x9d5   :  { %1798 = vmatprep.subr.mxu0 %v3524_v28 }
 0x9d6   :  { %1799 = vmatpush1.msra.mxu0 %v3530_v29 }
 0x9d7   :  { %1952 = vmatprep.subr.mxu0 %v3301_v13  ;;  %v1469_v13 = vrot.slane %v2440_v43, 2 }
 0xa67   :  { %v1284_v37 = vpop.f32.mrf.mxu0 }
 0xa68   :  { %v1285_v56 = vadd.f32 %v1284_v37, %v3068_v54 }
 0xa69   :  { %v1286_v44 = vpop.f32.mrf.mxu0 }
 0xa6a   :  { %v1287_v0 = vadd.f32 %v1286_v44, %v3078_v3 }
 0xa77   :  { %v1452_v40 = vpop.f32.mrf.mxu0 }
 0xa78   :  { %v1459_v59 = vadd.f32 %v2440_v43, %v1452_v40 }
 0xa79   :  { %v1454_v48 = vpop.f32.mrf.mxu0 }
 0xa7a   :  { %v2441_v47 = vmul.f32 -1.442695, %v1459_v59  ;;  %v1466_v38 = vadd.f32 %v3541_v23, %v1454_v48 }
 0xa7c   :  { %2548 = vpow2.f32 %v2441_v47 }
 0xa87   :  { %v1632_v53 = vpop.f32.mrf.mxu0 }
 0xa88   :  { %v1637_v52 = vadd.f32 %v1632_v53, %v1285_v56 }
 0xa89   :  { %v2549_v41 = vpop.eup %2548  ;;  %v1634_v8 = vpop.f32.mrf.mxu0 }
 0xa8a   :  { %v1463_v36 = vadd.f32 1.0, %v2549_v41  ;;  %v2444_v45 = vmul.f32 -1.442695, %v1637_v52  ;;  %v1644_v9 = vadd.f32 %v3076_v55, %v1634_v8  ;;  %v3624_v8 = vld [vmem:[%s3838_s4 + $0x40] sm:$0xff] }
 0xa8c   :  { %2550 = vrcp.f32 %v1463_v36 }
 0xa8d   :  { %2552 = vpow2.f32 %v2444_v45 }
 0xa99   :  { %v2551_v1 = vpop.eup %2550 }
 0xa9a   :  { %v2553_v2 = vpop.eup %2552  ;;  %v1467_v4 = vmul.f32 %v2551_v1, %v1466_v38  ;;  %v1473_v59 = vsub.f32 1.0, %v2551_v1  ;;  %v1479_v48 = vmul.f32 %v2551_v1, %v3314_v5  ;;  %v3587_v38 = vld [vmem:[%s3838_s4 + $0x70] sm:$0xff]  ;;  %v3594_v1 = vld [vmem:[%s3838_s4 + $0x68] sm:$0xff] }
 0xa9b   :  { %v1641_v6 = vadd.f32 1.0, %v2553_v2  ;;  %v3600_v2 = vld [vmem:[%s3838_s4 + $0x60] sm:$0xff] }
 0xa9c   :  { %v1471_v7 = vadd.f32 %v1469_v13, %v1467_v4  ;;  %v3606_v4 = vld [vmem:[%s3838_s4 + $0x58] sm:$0xff] }
 0xa9d   :  { %2554 = vrcp.f32 %v1641_v6  ;;  %v3612_v6 = vld [vmem:[%s3838_s4 + $0x50] sm:$0xff] }
 0xa9e   :  { %2556 = vtanh.f32 %v1471_v7  ;;  %v3618_v7 = vld [vmem:[%s3838_s4 + $0x48] sm:$0xff] }
 0xaaa   :  { %v2555_v10 = vpop.eup %2554 }
 0xaab   :  { %v2557_v12 = vpop.eup %2556  ;;  %v1645_v37 = vmul.f32 %v2555_v10, %v1644_v9  ;;  %v1648_v44 = vsub.f32 1.0, %v2555_v10  ;;  %v1654_v41 = vmul.f32 %v2555_v10, %v3320_v11  ;;  %v3581_v11 = vld [vmem:[%s3838_s4 + $0x78] sm:$0xff]  ;;  %v3636_v10 = vld [vmem:[%s3838_s4 + $0x30] sm:$0xff] }
 0xaac   :  { %1475 = vrot.lane.b32.xlu0 %v2557_v12, %s2641_s21  ;;  %v3630_v9 = vld [vmem:[%s3838_s4 + $0x38] sm:$0xff]  ;;  %v3642_v12 = vld [vmem:[%s3838_s4 + $0x28] sm:$0xff] }
 0xaad   :  { %v1646_v43 = vadd.f32 %v1645_v37, %v1287_v0  ;;  %v3648_v0 = vld [vmem:[%s3838_s4 + $0x20] sm:$0xff]  ;;  %v3654_v37 = vld [vmem:[%s3838_s4 + $0x18] sm:$0xff] }
 0xaaf   :  { %2558 = vtanh.f32 %v1646_v43  ;;  %v3660_v43 = vld [vmem:[%s3838_s4 + $0x10] sm:$0xff] }
 0xabc   :  { %v2559_v40 = vpop.eup %2558 }
 0xabd   :  { %1650 = vrot.lane.b32.xlu1 %v2559_v40, %s2641_s21  ;;  %v3666_v40 = vld [vmem:[%s3838_s4 + $0x8] sm:$0xff] }
 0xb1e   :  { %v1476_v47 = vpop.permute.xlu0 %1475 }
 0xb1f   :  { %v1478_v56 = vmul.f32 %v1476_v47, %v1473_v59  ;;  %v3672_v59 = vld [vmem:[%s3838_s4] sm:$0xff] }
 0xb21   :  { %v3549_v53 = vadd.f32 %v1479_v48, %v1478_v56 }
 0xb23   :  { %v1488_v55 = vrot.slane %v3549_v53, %v2925_v57 }
 0xb25   :  { %1489 = vrot.lane.b32.xlu0 %v1488_v55, %s2641_s21 }
 0xb2f   :  { %v1651_v52 = vpop.permute.xlu1 %1650 }
 0xb30   :  { %v1653_v36 = vmul.f32 %v1651_v52, %v1648_v44  ;;  %v3702_v52 = vld [vmem:[%s3840_s6] ss:$0 sm:$0xff] }
 0xb32   :  { %v3555_v45 = vadd.f32 %v1654_v41, %v1653_v36 }
 0xb34   :  { %1657 = vrot.lane.b32.xlu1 %v3555_v45, %s2641_s21 }
 0xb97   :  { %v1490_v13 = vpop.permute.xlu0 %1489 }
 0xb98   :  { %2442 = vmatmul.mubr.msk.f32.vlgmr.msra.gmra.mxu1 %vm106_vm0, %v1490_v13 }
 0xb99   :  { %1678 = vmatpush1.msra.mxu1 %v3328_v49  ;;  %1725 = vmatprep.mubr.f32.mxu1 %v3879_v58 }
 0xb9a   :  { %1679 = vmatprep.subr.mxu1 %v3335_v50 }
 0xb9b   :  { %1680 = vmatpush1.msra.mxu1 %v3341_v14 }
 0xb9c   :  { %1681 = vmatprep.subr.mxu1 %v3347_v15 }
 0xb9d   :  { %1682 = vmatpush1.msra.mxu1 %v3353_v16 }
 0xb9e   :  { %1683 = vmatprep.subr.mxu1 %v3359_v30 }
 0xb9f   :  { %1684 = vmatpush1.msra.mxu1 %v3365_v31 }
 0xba0   :  { %1685 = vmatprep.subr.mxu1 %v3371_v32 }
 0xba1   :  { %1686 = vmatpush1.msra.mxu1 %v3377_v33 }
 0xba2   :  { %1687 = vmatprep.subr.mxu1 %v3383_v34 }
 0xba3   :  { %1688 = vmatpush1.msra.mxu1 %v3389_v35 }
 0xba4   :  { %1689 = vmatprep.subr.mxu1 %v3395_v42 }
 0xba5   :  { %1690 = vmatpush1.msra.mxu1 %v3401_v46 }
 0xba6   :  { %v1658_v5 = vpop.permute.xlu1 %1657  ;;  %1691 = vmatprep.subr.mxu1 %v3407_v51 }
 0xba7   :  { %1660 = vst.msk [vmem:[#allocation2 + $0x8] sm:$0x3] %vm559_vm1, %v1658_v5  ;;  %1692 = vmatpush1.msra.mxu1 %v3414_v61 }
 0xba8   :  { %2445 = vmatmul.mubr.msk.f32.vlgmr.msra.gmra.mxu1 %vm106_vm0, %v1490_v13  ;;  %1857 = vmatprep.subr.mxu1 %v3581_v11 }
 0xba9   :  { %1858 = vmatpush1.msra.mxu1 %v3587_v38  ;;  %1905 = vmatprep.mubr.f32.mxu1 %v3879_v58 }
 0xbaa   :  { %1859 = vmatprep.subr.mxu1 %v3594_v1 }
 0xbab   :  { %1860 = vmatpush1.msra.mxu1 %v3600_v2 }
 0xbac   :  { %1861 = vmatprep.subr.mxu1 %v3606_v4 }
 0xbad   :  { %1862 = vmatpush1.msra.mxu1 %v3612_v6 }
 0xbae   :  { %1863 = vmatprep.subr.mxu1 %v3618_v7 }
 0xbaf   :  { %1864 = vmatpush1.msra.mxu1 %v3624_v8 }
 0xbb0   :  { %1865 = vmatprep.subr.mxu1 %v3630_v9 }
 0xbb1   :  { %1866 = vmatpush1.msra.mxu1 %v3636_v10 }
 0xbb2   :  { %1867 = vmatprep.subr.mxu1 %v3642_v12 }
 0xbb3   :  { %1868 = vmatpush1.msra.mxu1 %v3648_v0 }
 0xbb4   :  { %1869 = vmatprep.subr.mxu1 %v3654_v37 }
 0xbb5   :  { %1870 = vmatpush1.msra.mxu1 %v3660_v43 }
 0xbb6   :  { %1871 = vmatprep.subr.mxu1 %v3666_v40 }
 0xbb7   :  { %1872 = vmatpush1.msra.mxu1 %v3672_v59 }
 0xbb8   :  { %2449 = vmatmul.mubr.msk.f32.vlgmr.msra.gmra.mxu1 %vm106_vm0, %v1658_v5  ;;  %2059 = vmatprep.subr.mxu1 %v3439_v39 }
 0xbb9   :  { %2060 = vmatpush1.msra.mxu1 %v3445_v60  ;;  %2107 = vmatprep.mubr.f32.mxu1 %v3879_v58 }
 0xbba   :  { %2061 = vmatprep.subr.mxu1 %v3452_v62  ;;  %v2446_v62 = vld [vmem:[%s3835_s0 + $0x18] sm:$0xf] }
 0xbbb   :  { %2062 = vmatpush1.msra.mxu1 %v3458_v63 }
 0xbbc   :  { %2063 = vmatprep.subr.mxu1 %v3464_v17 }
 0xbbd   :  { %2064 = vmatpush1.msra.mxu1 %v3470_v18 }
 0xbbe   :  { %2065 = vmatprep.subr.mxu1 %v3476_v19 }
 0xbbf   :  { %2066 = vmatpush1.msra.mxu1 %v3482_v20 }
 0xbc0   :  { %2067 = vmatprep.subr.mxu1 %v3488_v21 }
 0xbc1   :  { %2068 = vmatpush1.msra.mxu1 %v3494_v22 }
 0xbc2   :  { %2069 = vmatprep.subr.mxu1 %v3500_v24 }
 0xbc3   :  { %2070 = vmatpush1.msra.mxu1 %v3506_v25 }
 0xbc4   :  { %2071 = vmatprep.subr.mxu1 %v3512_v26 }
 0xbc5   :  { %2072 = vmatpush1.msra.mxu1 %v3518_v27  ;;  %v1744_v27 = vrot.slane %v2446_v62, 2 }
 0xbc6   :  { %2073 = vmatprep.subr.mxu1 %v3524_v28 }
 0xbc7   :  { %2074 = vmatpush1.msra.mxu1 %v3530_v29 }
 0xbc8   :  { %2229 = vmatprep.subr.mxu1 %v3581_v11 }
 0xc58   :  { %v1559_v39 = vpop.f32.mrf.mxu1 }
 0xc59   :  { %v1560_v20 = vadd.f32 %v1559_v39, %v3068_v54 }
 0xc5a   :  { %v1561_v60 = vpop.f32.mrf.mxu1 }
 0xc5b   :  { %v1562_v5 = vadd.f32 %v1561_v60, %v3078_v3 }
 0xc68   :  { %v1727_v63 = vpop.f32.mrf.mxu1 }
 0xc69   :  { %v1734_v17 = vadd.f32 %v2446_v62, %v1727_v63 }
 0xc6a   :  { %v1729_v19 = vpop.f32.mrf.mxu1 }
 0xc6b   :  { %v2447_v18 = vmul.f32 -1.442695, %v1734_v17  ;;  %v1741_v28 = vadd.f32 %v3541_v23, %v1729_v19 }
 0xc6d   :  { %2560 = vpow2.f32 %v2447_v18 }
 0xc78   :  { %v1907_v21 = vpop.f32.mrf.mxu1 }
 0xc79   :  { %v1912_v22 = vadd.f32 %v1907_v21, %v1560_v20 }
 0xc7a   :  { %v2561_v24 = vpop.eup %2560  ;;  %v1909_v44 = vpop.f32.mrf.mxu1 }
 0xc7b   :  { %v1738_v25 = vadd.f32 1.0, %v2561_v24  ;;  %v2450_v26 = vmul.f32 -1.442695, %v1912_v22  ;;  %v1919_v41 = vadd.f32 %v3702_v52, %v1909_v44 }
 0xc7d   :  { %2562 = vrcp.f32 %v1738_v25 }
 0xc7e   :  { %2564 = vpow2.f32 %v2450_v26 }
 0xc8a   :  { %v2563_v29 = vpop.eup %2562 }
 0xc8b   :  { %v2565_v47 = vpop.eup %2564  ;;  %v1742_v48 = vmul.f32 %v2563_v29, %v1741_v28  ;;  %v1748_v17 = vsub.f32 1.0, %v2563_v29  ;;  %v1754_v19 = vmul.f32 %v2563_v29, %v3549_v53 }
 0xc8c   :  { %v1916_v56 = vadd.f32 1.0, %v2565_v47 }
 0xc8d   :  { %v1746_v55 = vadd.f32 %v1744_v27, %v1742_v48 }
 0xc8e   :  { %2566 = vrcp.f32 %v1916_v56 }
 0xc8f   :  { %2568 = vtanh.f32 %v1746_v55 }
 0xc9b   :  { %v2567_v36 = vpop.eup %2566 }
 0xc9c   :  { %v2569_v13 = vpop.eup %2568  ;;  %v1920_v39 = vmul.f32 %v2567_v36, %v1919_v41  ;;  %v1923_v60 = vsub.f32 1.0, %v2567_v36  ;;  %v1929_v25 = vmul.f32 %v2567_v36, %v3555_v45 }
 0xc9d   :  { %1750 = vrot.lane.b32.xlu0 %v2569_v13, %s2641_s21 }
 0xc9e   :  { %v1921_v62 = vadd.f32 %v1920_v39, %v1562_v5 }
 0xca0   :  { %2570 = vtanh.f32 %v1921_v62 }
 0xcad   :  { %v2571_v63 = vpop.eup %2570 }
 0xcae   :  { %1925 = vrot.lane.b32.xlu1 %v2571_v63, %s2641_s21 }
 0xd0f   :  { %v1751_v18 = vpop.permute.xlu0 %1750 }
 0xd10   :  { %v1753_v20 = vmul.f32 %v1751_v18, %v1748_v17 }
 0xd12   :  { %v3709_v21 = vadd.f32 %v1754_v19, %v1753_v20 }
 0xd14   :  { %v1763_v22 = vrot.slane %v3709_v21, %v2925_v57 }
 0xd16   :  { %1764 = vrot.lane.b32.xlu0 %v1763_v22, %s2641_s21 }
 0xd20   :  { %v1926_v24 = vpop.permute.xlu1 %1925 }
 0xd21   :  { %v1928_v26 = vmul.f32 %v1926_v24, %v1923_v60 }
 0xd23   :  { %v3715_v27 = vadd.f32 %v1929_v25, %v1928_v26 }
 0xd25   :  { %1932 = vrot.lane.b32.xlu1 %v3715_v27, %s2641_s21 }
 0xd88   :  { %v1765_v28 = vpop.permute.xlu0 %1764 }
 0xd89   :  { %2448 = vmatmul.mubr.msk.f32.vlgmr.msra.gmra.mxu0 %vm106_vm0, %v1765_v28 }
 0xd8a   :  { %1953 = vmatpush1.msra.mxu0 %v3328_v49  ;;  %2000 = vmatprep.mubr.f32.mxu0 %v3879_v58 }
 0xd8b   :  { %1954 = vmatprep.subr.mxu0 %v3335_v50  ;;  %v2308_v50 = vld [vmem:[#allocation2] sm:$0xff] }
 0xd8c   :  { %1955 = vmatpush1.msra.mxu0 %v3341_v14 }
 0xd8d   :  { %1956 = vmatprep.subr.mxu0 %v3347_v15 }
 0xd8e   :  { %1957 = vmatpush1.msra.mxu0 %v3353_v16  ;;  %v2452_v16 = vld [vmem:[%s3835_s0 + $0x1c] sm:$0xf] }
 0xd8f   :  { %1958 = vmatprep.subr.mxu0 %v3359_v30  ;;  %v2019_v53 = vrot.slane %v2452_v16, 2 }
 0xd90   :  { %1959 = vmatpush1.msra.mxu0 %v3365_v31 }
 0xd91   :  { %1960 = vmatprep.subr.mxu0 %v3371_v32 }
 0xd92   :  { %1961 = vmatpush1.msra.mxu0 %v3377_v33 }
 0xd93   :  { %1962 = vmatprep.subr.mxu0 %v3383_v34 }
 0xd94   :  { %1963 = vmatpush1.msra.mxu0 %v3389_v35 }
 0xd95   :  { %1964 = vmatprep.subr.mxu0 %v3395_v42 }
 0xd96   :  { %1965 = vmatpush1.msra.mxu0 %v3401_v46 }
 0xd97   :  { %1966 = vmatprep.subr.mxu0 %v3407_v51  ;;  %v1933_v49 = vpop.permute.xlu1 %1932 }
 0xd98   :  { %1935 = vst.msk [vmem:[#allocation2 + $0xa] sm:$0x3] %vm559_vm1, %v1933_v49  ;;  %1967 = vmatpush1.msra.mxu0 %v3414_v61 }
 0xd99   :  { %2451 = vmatmul.mubr.msk.f32.vlgmr.msra.gmra.mxu0 %vm106_vm0, %v1765_v28  ;;  %2132 = vmatprep.subr.mxu0 %v3581_v11 }
 0xd9a   :  { %2133 = vmatpush1.msra.mxu0 %v3587_v38  ;;  %2180 = vmatprep.mubr.f32.mxu0 %v3879_v58 }
 0xd9b   :  { %2134 = vmatprep.subr.mxu0 %v3594_v1 }
 0xd9c   :  { %2135 = vmatpush1.msra.mxu0 %v3600_v2 }
 0xd9d   :  { %2136 = vmatprep.subr.mxu0 %v3606_v4 }
 0xd9e   :  { %2137 = vmatpush1.msra.mxu0 %v3612_v6 }
 0xd9f   :  { %2138 = vmatprep.subr.mxu0 %v3618_v7 }
 0xda0   :  { %2139 = vmatpush1.msra.mxu0 %v3624_v8 }
 0xda1   :  { %2140 = vmatprep.subr.mxu0 %v3630_v9 }
 0xda2   :  { %2141 = vmatpush1.msra.mxu0 %v3636_v10 }
 0xda3   :  { %2142 = vmatprep.subr.mxu0 %v3642_v12 }
 0xda4   :  { %2143 = vmatpush1.msra.mxu0 %v3648_v0 }
 0xda5   :  { %2144 = vmatprep.subr.mxu0 %v3654_v37 }
 0xda6   :  { %2145 = vmatpush1.msra.mxu0 %v3660_v43 }
 0xda7   :  { %2146 = vmatprep.subr.mxu0 %v3666_v40 }
 0xda8   :  { %2147 = vmatpush1.msra.mxu0 %v3672_v59 }
 0xda9   :  { %2455 = vmatmul.mubr.msk.f32.vlgmr.msra.gmra.mxu0 %vm106_vm0, %v1933_v49  ;;  %v2311_v49 = vld [vmem:[%s3841_s7 + $0x8] sm:$0xff] }
 0xdaa   :  { %2488 = vmatprep.mubr.msk.f32.mxu0 %vm106_vm0, %v2308_v50  ;;  %v2310_v50 = vld [vmem:[%s3841_s7] sm:$0xff] }
 0xe49   :  { %v1834_v14 = vpop.f32.mrf.mxu0 }
 0xe4a   :  { %v1835_v34 = vadd.f32 %v1834_v14, %v3068_v54 }
 0xe4b   :  { %v1836_v15 = vpop.f32.mrf.mxu0 }
 0xe4c   :  { %v1837_v13 = vadd.f32 %v1836_v15, %v3078_v3 }
 0xe59   :  { %v2002_v30 = vpop.f32.mrf.mxu0 }
 0xe5a   :  { %v2009_v31 = vadd.f32 %v2452_v16, %v2002_v30 }
 0xe5b   :  { %v2004_v33 = vpop.f32.mrf.mxu0 }
 0xe5c   :  { %v2453_v32 = vmul.f32 -1.442695, %v2009_v31  ;;  %v2016_v45 = vadd.f32 %v3541_v23, %v2004_v33 }
 0xe5e   :  { %2572 = vpow2.f32 %v2453_v32 }
 0xe69   :  { %v2182_v35 = vpop.f32.mrf.mxu0 }
 0xe6a   :  { %v2187_v42 = vadd.f32 %v2182_v35, %v1835_v34  ;;  %v2459_v34 = vld [vmem:[%s3842_s8] ss:$0 sm:$0xff] }
 0xe6b   :  { %v2573_v46 = vpop.eup %2572  ;;  %v2184_v55 = vpop.f32.mrf.mxu0 }
 0xe6c   :  { %v2013_v51 = vadd.f32 1.0, %v2573_v46  ;;  %v2456_v61 = vmul.f32 -1.442695, %v2187_v42  ;;  %v2194_v44 = vadd.f32 %v3702_v52, %v2184_v55 }
 0xe6e   :  { %2574 = vrcp.f32 %v2013_v51 }
 0xe6f   :  { %2576 = vpow2.f32 %v2456_v61 }
 0xe7b   :  { %v2575_v11 = vpop.eup %2574 }
 0xe7c   :  { %v2577_v29 = vpop.eup %2576  ;;  %v2017_v47 = vmul.f32 %v2575_v11, %v2016_v45  ;;  %v2023_v62 = vsub.f32 1.0, %v2575_v11  ;;  %v2029_v17 = vmul.f32 %v2575_v11, %v3709_v21  ;;  %v2313_v21 = vld [vmem:[%s3841_s7 + $0x18] sm:$0xff] }
 0xe7d   :  { %v2191_v48 = vadd.f32 1.0, %v2577_v29 }
 0xe7e   :  { %v2021_v56 = vadd.f32 %v2019_v53, %v2017_v47 }
 0xe7f   :  { %2578 = vrcp.f32 %v2191_v48 }
 0xe80   :  { %2580 = vtanh.f32 %v2021_v56 }
 0xe8c   :  { %v2579_v41 = vpop.eup %2578 }
 0xe8d   :  { %v2581_v36 = vpop.eup %2580  ;;  %v2195_v5 = vmul.f32 %v2579_v41, %v2194_v44  ;;  %v2198_v22 = vsub.f32 1.0, %v2579_v41  ;;  %v2204_v24 = vmul.f32 %v2579_v41, %v3715_v27  ;;  %v2312_v27 = vld [vmem:[%s3841_s7 + $0x10] sm:$0xff] }
 0xe8e   :  { %2025 = vrot.lane.b32.xlu0 %v2581_v36, %s2641_s21 }
 0xe8f   :  { %v2196_v39 = vadd.f32 %v2195_v5, %v1837_v13 }
 0xe91   :  { %2582 = vtanh.f32 %v2196_v39 }
 0xe9e   :  { %v2583_v23 = vpop.eup %2582 }
 0xe9f   :  { %2200 = vrot.lane.b32.xlu1 %v2583_v23, %s2641_s21 }
 0xf00   :  { %v2026_v63 = vpop.permute.xlu0 %2025 }
 0xf01   :  { %v2028_v18 = vmul.f32 %v2026_v63, %v2023_v62 }
 0xf03   :  { %v2030_v19 = vadd.f32 %v2029_v17, %v2028_v18 }
 0xf05   :  { %v2038_v20 = vrot.slane %v2030_v19, %v2925_v57 }
 0xf07   :  { %2039 = vrot.lane.b32.xlu0 %v2038_v20, %s2641_s21 }
 0xf11   :  { %v2201_v60 = vpop.permute.xlu1 %2200 }
 0xf12   :  { %v2203_v25 = vmul.f32 %v2201_v60, %v2198_v22 }
 0xf14   :  { %v3770_v26 = vadd.f32 %v2204_v24, %v2203_v25 }
 0xf16   :  { %2207 = vrot.lane.b32.xlu1 %v3770_v26, %s2641_s21 }
 0xf79   :  { %v2040_v28 = vpop.permute.xlu0 %2039 }
 0xf7a   :  { %2454 = vmatmul.mubr.msk.f32.vlgmr.msra.gmra.mxu1 %vm106_vm0, %v2040_v28 }
 0xf7b   :  { %2230 = vmatpush1.msra.mxu1 %v3587_v38  ;;  %2277 = vmatprep.mubr.f32.mxu1 %v3879_v58 }
 0xf7c   :  { %2231 = vmatprep.subr.mxu1 %v3594_v1 }
 0xf7d   :  { %2232 = vmatpush1.msra.mxu1 %v3600_v2 }
 0xf7e   :  { %2233 = vmatprep.subr.mxu1 %v3606_v4 }
 0xf7f   :  { %2234 = vmatpush1.msra.mxu1 %v3612_v6 }
 0xf80   :  { %2235 = vmatprep.subr.mxu1 %v3618_v7 }
 0xf81   :  { %2236 = vmatpush1.msra.mxu1 %v3624_v8 }
 0xf82   :  { %2237 = vmatprep.subr.mxu1 %v3630_v9 }
 0xf83   :  { %2238 = vmatpush1.msra.mxu1 %v3636_v10 }
 0xf84   :  { %2239 = vmatprep.subr.mxu1 %v3642_v12 }
 0xf85   :  { %2240 = vmatpush1.msra.mxu1 %v3648_v0 }
 0xf86   :  { %2241 = vmatprep.subr.mxu1 %v3654_v37 }
 0xf87   :  { %2242 = vmatpush1.msra.mxu1 %v3660_v43 }
 0xf88   :  { %2243 = vmatprep.subr.mxu1 %v3666_v40  ;;  %v2208_v57 = vpop.permute.xlu1 %2207  ;;  %v2316_v40 = vld [vmem:[%s3841_s7 + $0x30] sm:$0xff] }
 0xf89   :  { %2210 = vst.msk [vmem:[#allocation2 + $0xc] sm:$0x3] %vm559_vm1, %v2208_v57  ;;  %2244 = vmatpush1.msra.mxu1 %v3672_v59  ;;  %v2315_v59 = vld [vmem:[%s3841_s7 + $0x28] sm:$0xff] }
 0xf8a   :  { %2457 = vmatmul.mubr.msk.f32.vlgmr.msra.gmra.mxu1 %vm106_vm0, %v2208_v57 }
0x103a   :  { %v2109_v58 = vpop.f32.mrf.mxu1 }
0x103b   :  { %v2110_v1 = vadd.f32 %v2109_v58, %v3068_v54  ;;  %v2317_v54 = vld [vmem:[%s3841_s7 + $0x38] sm:$0xff] }
0x103c   :  { %v2111_v38 = vpop.f32.mrf.mxu1  ;;  %2472 = vmatprep.subr.mxu0 %v2317_v54 }
0x103d   :  { %v2112_v0 = vadd.f32 %v2111_v38, %v3078_v3  ;;  %2473 = vmatpush3.msra.mxu0 %v2317_v54  ;;  %v2314_v3 = vld [vmem:[%s3841_s7 + $0x20] sm:$0xff] }
0x103e   :  { %2474 = vmatprep.subr.mxu0 %v2316_v40 }
0x103f   :  { %2475 = vmatpush3.msra.mxu0 %v2316_v40 }
0x1040   :  { %2476 = vmatprep.subr.mxu0 %v2315_v59 }
0x1041   :  { %2477 = vmatpush3.msra.mxu0 %v2315_v59 }
0x1042   :  { %2478 = vmatprep.subr.mxu0 %v2314_v3 }
0x1043   :  { %2479 = vmatpush3.msra.mxu0 %v2314_v3 }
0x1044   :  { %2480 = vmatprep.subr.mxu0 %v2313_v21 }
0x1045   :  { %2481 = vmatpush3.msra.mxu0 %v2313_v21 }
0x1046   :  { %2482 = vmatprep.subr.mxu0 %v2312_v27 }
0x1047   :  { %2483 = vmatpush3.msra.mxu0 %v2312_v27 }
0x1048   :  { %2484 = vmatprep.subr.mxu0 %v2311_v49 }
0x1049   :  { %2485 = vmatpush3.msra.mxu0 %v2311_v49 }
0x104a   :  { %v2279_v2 = vpop.f32.mrf.mxu1  ;;  %2486 = vmatprep.subr.mxu0 %v2310_v50 }
0x104b   :  { %v2284_v4 = vadd.f32 %v2279_v2, %v2110_v1  ;;  %2487 = vmatpush3.msra.mxu0 %v2310_v50 }
0x104c   :  { %v2281_v9 = vpop.f32.mrf.mxu1 }
0x104d   :  { %v2458_v6 = vmul.f32 -1.442695, %v2284_v4  ;;  %v2291_v10 = vadd.f32 %v3702_v52, %v2281_v9 }
0x104f   :  { %2584 = vpow2.f32 %v2458_v6 }
0x105c   :  { %v2585_v7 = vpop.eup %2584 }
0x105d   :  { %v2288_v8 = vadd.f32 1.0, %v2585_v7 }
0x105f   :  { %2586 = vrcp.f32 %v2288_v8 }
0x106c   :  { %v2587_v12 = vpop.eup %2586 }
0x106d   :  { %v2292_v37 = vmul.f32 %v2587_v12, %v2291_v10  ;;  %v2295_v14 = vsub.f32 1.0, %v2587_v12  ;;  %v2301_v16 = vmul.f32 %v2587_v12, %v3770_v26 }
0x106f   :  { %v2293_v43 = vadd.f32 %v2292_v37, %v2112_v0 }
0x1071   :  { %2588 = vtanh.f32 %v2293_v43 }
0x107e   :  { %v2589_v52 = vpop.eup %2588 }
0x107f   :  { %2297 = vrot.lane.b32.xlu0 %v2589_v52, %s2641_s21 }
0x10f1   :  { %v2298_v15 = vpop.permute.xlu0 %2297 }
0x10f2   :  { %v2300_v30 = vmul.f32 %v2298_v15, %v2295_v14 }
0x10f4   :  { %v2302_v31 = vadd.f32 %v2301_v16, %v2300_v30 }
0x10f6   :  { %2304 = vrot.lane.b32.xlu1 %v2302_v31, %s2641_s21 }
0x1168   :  { %v2305_v32 = vpop.permute.xlu1 %2304 }
0x1169   :  { %2307 = vst.msk [vmem:[#allocation2 + $0xe] sm:$0x3] %vm559_vm1, %v2305_v32 }
0x1170   :  { %v2309_v33 = vld [vmem:[#allocation2 + $0x8] sm:$0xff] }
0x1171   :  { %2489 = vmatmul.mubr.msk.f32.vlgmr.msra.gmra.mxu0 %vm106_vm0, %v2309_v33 }
0x1231   :  { %v2490_v35 = vpop.f32.mrf.mxu0 }
0x1232   :  { %v2403_v42 = vadd.f32 %v2490_v35, %v2459_v34 }
0x1233   :  { %v2397_v46 = vpop.f32.mrf.mxu0 }
0x1234   :  { %2407 = vst [vmem:[%s3843_s9 + $0x8] sm:$0xff] %v2403_v42  ;;  %v2398_v51 = vadd.f32 %v2459_v34, %v2397_v46 }
0x1236   :  { %2406 = vst [vmem:[%s3843_s9] sm:$0xff] %v2398_v51 }

</bundles_post_ra>
